<compile_context>
chip_gen: v7x
topology: tpu7x:2x2x1
jax: 0.10.0
libtpu: 0.0.40
codegen_flags: <defaults>
</compile_context>

<pallas_src>
import jax
import jax.numpy as jnp
from jax import lax
from jax.experimental import pallas as pl
from jax.experimental.pallas import tpu as pltpu


_MAX_PAD = 3          # largest "same" padding in the network (k=7 -> pad 3)
_MAX_LANES = 8192     # folded batch*length lanes per grid step (VMEM-safe on all gens)


# -----------------------------------------------------------------------------
# In-kernel helpers (operate on channels-first (C, NB*L) values).
# -----------------------------------------------------------------------------
def _shift_masked(h, d, masks):
    """Per-sample lane shift with zero padding, using precomputed masks.

    out[..., n*L + l] = h[..., n*L + l + d] if 0 <= l + d < L else 0.
    `masks` is a python list of (1, lanes) 0/1 arrays, one per shift
    d in [-_MAX_PAD, _MAX_PAD]; boundary handling is a single multiply.
    """
    if d == 0:
        return h
    lanes = h.shape[-1]
    rolled = pltpu.roll(h, shift=(-d) % lanes, axis=h.ndim - 1)
    return rolled * masks[d + _MAX_PAD]


def _conv_first(x, w_ref, b_ref, masks):
    """Layer 0 (Cin=1): pure VPU broadcast-MAC.  x:(1,lanes) w:(16,7) b:(16,1)."""
    w = w_ref[...]
    K = w.shape[1]
    pad = (K - 1) // 2
    acc = jnp.zeros((w.shape[0], x.shape[-1]), jnp.float32)
    for t in range(K):
        xs = _shift_masked(x, t - pad, masks)
        acc = acc + w[:, t:t + 1] * xs                    # (16,1)*(1,lanes)
    return jnp.maximum(acc + b_ref[...], 0.0)


def _conv_mid_shift_in(h, w_ref, b_ref, masks):
    """Cin <= Cout: shift/mask the (Cin,lanes) input, per-tap bf16 MXU matmul.
    h:(Cin,lanes) w:(K,Cout,Cin) b:(Cout,1)."""
    K, Cout, _ = w_ref.shape
    pad = (K - 1) // 2
    w16 = w_ref[...].astype(jnp.bfloat16)
    acc = jnp.zeros((Cout, h.shape[-1]), jnp.float32)
    for t in range(K):
        hs = _shift_masked(h, t - pad, masks)
        acc = acc + jnp.dot(w16[t], hs.astype(jnp.bfloat16),
                            preferred_element_type=jnp.float32)
    return jnp.maximum(acc + b_ref[...], 0.0)


def _conv_mid_shift_out(h, w_ref, b_ref, masks):
    """Cout < Cin: matmul the UNshifted input per tap, then shift/mask the
    smaller (Cout,lanes) result (roll/mask commutes with the channel
    contraction since both are pointwise along lanes)."""
    K, Cout, _ = w_ref.shape
    pad = (K - 1) // 2
    h16 = h.astype(jnp.bfloat16)
    w16 = w_ref[...].astype(jnp.bfloat16)
    acc = jnp.zeros((Cout, h.shape[-1]), jnp.float32)
    for t in range(K):
        m = jnp.dot(w16[t], h16, preferred_element_type=jnp.float32)
        acc = acc + _shift_masked(m, t - pad, masks)
    return jnp.maximum(acc + b_ref[...], 0.0)


def _conv_last(h, w_ref, b_ref, masks):
    """Layer 5 (Cout=1): one (K,Cin)@(Cin,lanes) matmul, then K single-row
    shifts + sum (no ReLU).  h:(16,lanes) w:(7,16) b:(1,1)."""
    K = w_ref.shape[0]
    pad = (K - 1) // 2
    h16 = h.astype(jnp.bfloat16)
    w16 = w_ref[...].astype(jnp.bfloat16)
    taps = jnp.dot(w16, h16, preferred_element_type=jnp.float32)   # (K, lanes)
    y = jnp.zeros((1, h.shape[-1]), jnp.float32)
    for t in range(K):
        y = y + _shift_masked(taps[t:t + 1, :], t - pad, masks)
    return y + b_ref[...]


# -----------------------------------------------------------------------------
# Fused kernel: all 6 layers on VMEM-resident activations, one batch tile/step.
# -----------------------------------------------------------------------------
def _fused_cnn_kernel(x_ref, masks_ref,
                      w0_ref, b0_ref, w1_ref, b1_ref, w2_ref, b2_ref,
                      w3_ref, b3_ref, w4_ref, b4_ref, w5_ref, b5_ref,
                      o_ref):
    # Load the 7 boundary masks once per grid step; reused by every tap below.
    masks = [masks_ref[i] for i in range(2 * _MAX_PAD + 1)]   # each (1, lanes)

    x = x_ref[0]                                         # (1, lanes)
    h = _conv_first(x, w0_ref, b0_ref, masks)            # (16, lanes)
    h = _conv_mid_shift_in(h, w1_ref, b1_ref, masks)     # (32, lanes)
    h = _conv_mid_shift_in(h, w2_ref, b2_ref, masks)     # (64, lanes)
    h = _conv_mid_shift_out(h, w3_ref, b3_ref, masks)    # (32, lanes)
    h = _conv_mid_shift_out(h, w4_ref, b4_ref, masks)    # (16, lanes)
    y = _conv_last(h, w5_ref, b5_ref, masks)             # (1, lanes)
    o_ref[0] = y.astype(o_ref.dtype)


# -----------------------------------------------------------------------------
# Parameter construction (PyTorch Conv1d shapes: (Cout, Cin, K)) and re-layout.
# -----------------------------------------------------------------------------
_LAYER_DEFS = [
    # (Cin, Cout, K)
    (1, 16, 7),
    (16, 32, 5),
    (32, 64, 3),
    (64, 32, 3),
    (32, 16, 5),
    (16, 1, 7),
]


def init_params(key):
    params = []
    for (cin, cout, k) in _LAYER_DEFS:
        key, kw, kb = jax.random.split(key, 3)
        bound = 1.0 / jnp.sqrt(cin * k)   # PyTorch Conv1d fan-in init rule
        w = jax.random.uniform(kw, (cout, cin, k), jnp.float32, -bound, bound)
        b = jax.random.uniform(kb, (cout,), jnp.float32, -bound, bound)
        params.append((w, b))
    return params


def _prep_params(params):
    """PyTorch Conv1d weights (Cout, Cin, K) -> kernel-friendly layouts."""
    (w0, b0), (w1, b1), (w2, b2), (w3, b3), (w4, b4), (w5, b5) = params
    flat = [w0[:, 0, :], b0.reshape(-1, 1)]                       # (16,7), (16,1)
    for w, b in ((w1, b1), (w2, b2), (w3, b3), (w4, b4)):
        flat += [jnp.transpose(w, (2, 0, 1)), b.reshape(-1, 1)]   # (K,Cout,Cin), (Cout,1)
    flat += [jnp.transpose(w5[0], (1, 0)), b5.reshape(1, 1)]      # (7,16), (1,1)
    return flat


def _build_masks(lanes, seg_len):
    """(7, 1, lanes) 0/1 masks: one per signed shift d in [-3, 3]."""
    lane = jnp.arange(lanes, dtype=jnp.int32) % seg_len
    rows = []
    for d in range(-_MAX_PAD, _MAX_PAD + 1):
        valid = jnp.logical_and(lane + d >= 0, lane + d < seg_len)
        rows.append(valid.astype(jnp.float32))
    return jnp.stack(rows).reshape(2 * _MAX_PAD + 1, 1, lanes)


def _pick_batch_block(n, length):
    """Samples per grid step: fold batch into lanes up to _MAX_LANES, but keep
    the grid >= 2 steps when possible so v7x's second TensorCore has work."""
    nb = max(1, min(n, _MAX_LANES // max(length, 1)))
    if n >= 2 and pl.cdiv(n, nb) < 2:
        nb = pl.cdiv(n, 2)
    return nb


# -----------------------------------------------------------------------------
# Full forward pass.  x is NCL (N, 1, L) like the PyTorch module.
# -----------------------------------------------------------------------------
@jax.jit
def cnn_denoiser_forward(x_ncl, params):
    N, cin, L = x_ncl.shape
    assert cin == 1, "CNNDenoiser expects a single input channel"
    x_ncl = x_ncl.astype(jnp.float32)

    nb = _pick_batch_block(N, L)
    n_pad = (-N) % nb                      # pad batch instead of shrinking nb
    if n_pad:
        x_ncl = jnp.concatenate(
            [x_ncl, jnp.zeros((n_pad, 1, L), jnp.float32)], axis=0)
    nt = (N + n_pad) // nb
    lanes = nb * L

    x2 = x_ncl.reshape(nt, 1, lanes)       # free row-major batch fold (NCL kept)
    masks = _build_masks(lanes, L)
    kparams = _prep_params(params)

    in_specs = [pl.BlockSpec((1, 1, lanes), lambda i: (i, 0, 0)),
                pl.BlockSpec(masks.shape, lambda i: (0, 0, 0))]
    for arr in kparams:                    # whole-array VMEM blocks, loaded once
        in_specs.append(
            pl.BlockSpec(arr.shape, lambda i, _nd=arr.ndim: (0,) * _nd))

    out = pl.pallas_call(
        _fused_cnn_kernel,
        out_shape=jax.ShapeDtypeStruct((nt, 1, lanes), jnp.float32),
        grid_spec=pltpu.PrefetchScalarGridSpec(
            num_scalar_prefetch=0,
            grid=(nt,),
            in_specs=in_specs,
            out_specs=pl.BlockSpec((1, 1, lanes), lambda i: (i, 0, 0)),
        ),
        compiler_params=pltpu.CompilerParams(
            dimension_semantics=("parallel",),
            vmem_limit_bytes=48 * 1024 * 1024),
    )(x2, masks, *kparams)

    return out.reshape(-1, 1, L)[:N]       # free reshape back to NCL, drop pad


# -----------------------------------------------------------------------------
# Pure-JAX reference (lax.conv_general_dilated) for correctness checking.
# -----------------------------------------------------------------------------
def reference_forward(x_ncl, params):
    h = x_ncl
    n_layers = len(params)
    for i, (w, b) in enumerate(params):
        k = w.shape[-1]
        pad = (k - 1) // 2
        h = lax.conv_general_dilated(
            h, w, window_strides=(1,), padding=[(pad, k - 1 - pad)],
            dimension_numbers=("NCH", "OIH", "NCH"))
        h = h + b[None, :, None]
        if i < n_layers - 1:
            h = jnp.maximum(h, 0.0)
    return h


if __name__ == "__main__":
    key = jax.random.PRNGKey(0)
    key, kx = jax.random.split(key)

    # Small input consistent with the module: (batch=2, channels=1, length=128).
    x = jax.random.normal(kx, (2, 1, 128), jnp.float32)
    params = init_params(key)

    out = jax.block_until_ready(cnn_denoiser_forward(x, params))
    ref = jax.block_until_ready(reference_forward(x, params))

    assert out.shape == ref.shape == x.shape
    # bf16 MXU operands (f32 accumulation) -> slightly looser tolerance than f32.
    assert jnp.allclose(out, ref, atol=3e-2, rtol=3e-2), "mismatch vs reference"

    print("KERNEL_OK")
</pallas_src>

<mosaic_0001>
module attributes {stable_mosaic.version = 11 : i64} {
  func.func @_fused_cnn_kernel(%arg0: i32, %arg1: memref<1x1x128xf32, #tpu.memory_space<vmem>>, %arg2: memref<7x1x128xf32, #tpu.memory_space<vmem>>, %arg3: memref<16x7xf32, #tpu.memory_space<vmem>>, %arg4: memref<16x1xf32, #tpu.memory_space<vmem>>, %arg5: memref<5x32x16xf32, #tpu.memory_space<vmem>>, %arg6: memref<32x1xf32, #tpu.memory_space<vmem>>, %arg7: memref<3x64x32xf32, #tpu.memory_space<vmem>>, %arg8: memref<64x1xf32, #tpu.memory_space<vmem>>, %arg9: memref<3x32x64xf32, #tpu.memory_space<vmem>>, %arg10: memref<32x1xf32, #tpu.memory_space<vmem>>, %arg11: memref<5x16x32xf32, #tpu.memory_space<vmem>>, %arg12: memref<16x1xf32, #tpu.memory_space<vmem>>, %arg13: memref<7x16xf32, #tpu.memory_space<vmem>>, %arg14: memref<1x1xf32, #tpu.memory_space<vmem>>, %arg15: memref<1x1x128xf32, #tpu.memory_space<vmem>>) attributes {dimension_semantics = [#tpu.dimension_semantics<parallel>], iteration_bounds = array<i64: 2>, scalar_prefetch = 0 : i64, scratch_operands = 0 : i64, tpu.core_type = #tpu.core_type<tc>, window_params = [{transform_indices = @transform_0, window_bounds = array<i64: 1, 1, 128>}, {pipeline_mode = #tpu.pipeline_mode<synchronous>, transform_indices = @transform_1, window_bounds = array<i64: 7, 1, 128>}, {pipeline_mode = #tpu.pipeline_mode<synchronous>, transform_indices = @transform_2, window_bounds = array<i64: 16, 7>}, {pipeline_mode = #tpu.pipeline_mode<synchronous>, transform_indices = @transform_3, window_bounds = array<i64: 16, 1>}, {pipeline_mode = #tpu.pipeline_mode<synchronous>, transform_indices = @transform_4, window_bounds = array<i64: 5, 32, 16>}, {pipeline_mode = #tpu.pipeline_mode<synchronous>, transform_indices = @transform_5, window_bounds = array<i64: 32, 1>}, {pipeline_mode = #tpu.pipeline_mode<synchronous>, transform_indices = @transform_6, window_bounds = array<i64: 3, 64, 32>}, {pipeline_mode = #tpu.pipeline_mode<synchronous>, transform_indices = @transform_7, window_bounds = array<i64: 64, 1>}, {pipeline_mode = #tpu.pipeline_mode<synchronous>, transform_indices = @transform_8, window_bounds = array<i64: 3, 32, 64>}, {pipeline_mode = #tpu.pipeline_mode<synchronous>, transform_indices = @transform_9, window_bounds = array<i64: 32, 1>}, {pipeline_mode = #tpu.pipeline_mode<synchronous>, transform_indices = @transform_10, window_bounds = array<i64: 5, 16, 32>}, {pipeline_mode = #tpu.pipeline_mode<synchronous>, transform_indices = @transform_11, window_bounds = array<i64: 16, 1>}, {pipeline_mode = #tpu.pipeline_mode<synchronous>, transform_indices = @transform_12, window_bounds = array<i64: 7, 16>}, {pipeline_mode = #tpu.pipeline_mode<synchronous>, transform_indices = @transform_13, window_bounds = array<i64: 1, 1>}, {transform_indices = @transform_14, window_bounds = array<i64: 1, 1, 128>}]} {
    %c0 = arith.constant 0 : index
    %c0_0 = arith.constant 0 : index
    %c0_1 = arith.constant 0 : index
    %0 = vector.load %arg2[%c0, %c0_0, %c0_1] : memref<7x1x128xf32, #tpu.memory_space<vmem>>, vector<1x1x128xf32>
    %1 = vector.shape_cast %0 : vector<1x1x128xf32> to vector<1x128xf32>
    %c1 = arith.constant 1 : index
    %c0_2 = arith.constant 0 : index
    %c0_3 = arith.constant 0 : index
    %2 = vector.load %arg2[%c1, %c0_2, %c0_3] : memref<7x1x128xf32, #tpu.memory_space<vmem>>, vector<1x1x128xf32>
    %3 = vector.shape_cast %2 : vector<1x1x128xf32> to vector<1x128xf32>
    %c2 = arith.constant 2 : index
    %c0_4 = arith.constant 0 : index
    %c0_5 = arith.constant 0 : index
    %4 = vector.load %arg2[%c2, %c0_4, %c0_5] : memref<7x1x128xf32, #tpu.memory_space<vmem>>, vector<1x1x128xf32>
    %5 = vector.shape_cast %4 : vector<1x1x128xf32> to vector<1x128xf32>
    %c4 = arith.constant 4 : index
    %c0_6 = arith.constant 0 : index
    %c0_7 = arith.constant 0 : index
    %6 = vector.load %arg2[%c4, %c0_6, %c0_7] : memref<7x1x128xf32, #tpu.memory_space<vmem>>, vector<1x1x128xf32>
    %7 = vector.shape_cast %6 : vector<1x1x128xf32> to vector<1x128xf32>
    %c5 = arith.constant 5 : index
    %c0_8 = arith.constant 0 : index
    %c0_9 = arith.constant 0 : index
    %8 = vector.load %arg2[%c5, %c0_8, %c0_9] : memref<7x1x128xf32, #tpu.memory_space<vmem>>, vector<1x1x128xf32>
    %9 = vector.shape_cast %8 : vector<1x1x128xf32> to vector<1x128xf32>
    %c6 = arith.constant 6 : index
    %c0_10 = arith.constant 0 : index
    %c0_11 = arith.constant 0 : index
    %10 = vector.load %arg2[%c6, %c0_10, %c0_11] : memref<7x1x128xf32, #tpu.memory_space<vmem>>, vector<1x1x128xf32>
    %11 = vector.shape_cast %10 : vector<1x1x128xf32> to vector<1x128xf32>
    %c0_12 = arith.constant 0 : index
    %c0_13 = arith.constant 0 : index
    %c0_14 = arith.constant 0 : index
    %12 = vector.load %arg1[%c0_12, %c0_13, %c0_14] : memref<1x1x128xf32, #tpu.memory_space<vmem>>, vector<1x1x128xf32>
    %13 = vector.shape_cast %12 : vector<1x1x128xf32> to vector<1x128xf32>
    %c0_15 = arith.constant 0 : index
    %c0_16 = arith.constant 0 : index
    %14 = vector.load %arg3[%c0_15, %c0_16] : memref<16x7xf32, #tpu.memory_space<vmem>>, vector<16x7xf32>
    %cst = arith.constant 0.000000e+00 : f32
    %15 = vector.broadcast %cst : f32 to vector<16x128xf32>
    %c3_i32 = arith.constant 3 : i32
    %16 = tpu.dynamic_rotate %13 by %c3_i32 dim 1 : vector<1x128xf32>, i32 -> vector<1x128xf32>
    %17 = arith.mulf %16, %1 : vector<1x128xf32>
    %18 = vector.extract_strided_slice %14 {offsets = [0, 0], sizes = [16, 1], strides = [1, 1]} : vector<16x7xf32> to vector<16x1xf32>
    %19 = vector.broadcast %18 : vector<16x1xf32> to vector<16x128xf32>
    %20 = vector.broadcast %17 : vector<1x128xf32> to vector<16x128xf32>
    %21 = arith.mulf %19, %20 : vector<16x128xf32>
    %22 = arith.addf %15, %21 : vector<16x128xf32>
    %c2_i32 = arith.constant 2 : i32
    %23 = tpu.dynamic_rotate %13 by %c2_i32 dim 1 : vector<1x128xf32>, i32 -> vector<1x128xf32>
    %24 = arith.mulf %23, %3 : vector<1x128xf32>
    %25 = vector.extract_strided_slice %14 {offsets = [0, 1], sizes = [16, 1], strides = [1, 1]} : vector<16x7xf32> to vector<16x1xf32>
    %26 = vector.broadcast %25 : vector<16x1xf32> to vector<16x128xf32>
    %27 = vector.broadcast %24 : vector<1x128xf32> to vector<16x128xf32>
    %28 = arith.mulf %26, %27 : vector<16x128xf32>
    %29 = arith.addf %22, %28 : vector<16x128xf32>
    %c1_i32 = arith.constant 1 : i32
    %30 = tpu.dynamic_rotate %13 by %c1_i32 dim 1 : vector<1x128xf32>, i32 -> vector<1x128xf32>
    %31 = arith.mulf %30, %5 : vector<1x128xf32>
    %32 = vector.extract_strided_slice %14 {offsets = [0, 2], sizes = [16, 1], strides = [1, 1]} : vector<16x7xf32> to vector<16x1xf32>
    %33 = vector.broadcast %32 : vector<16x1xf32> to vector<16x128xf32>
    %34 = vector.broadcast %31 : vector<1x128xf32> to vector<16x128xf32>
    %35 = arith.mulf %33, %34 : vector<16x128xf32>
    %36 = arith.addf %29, %35 : vector<16x128xf32>
    %37 = vector.extract_strided_slice %14 {offsets = [0, 3], sizes = [16, 1], strides = [1, 1]} : vector<16x7xf32> to vector<16x1xf32>
    %38 = vector.broadcast %37 : vector<16x1xf32> to vector<16x128xf32>
    %39 = vector.broadcast %13 : vector<1x128xf32> to vector<16x128xf32>
    %40 = arith.mulf %38, %39 : vector<16x128xf32>
    %41 = arith.addf %36, %40 : vector<16x128xf32>
    %c127_i32 = arith.constant 127 : i32
    %42 = tpu.dynamic_rotate %13 by %c127_i32 dim 1 : vector<1x128xf32>, i32 -> vector<1x128xf32>
    %43 = arith.mulf %42, %7 : vector<1x128xf32>
    %44 = vector.extract_strided_slice %14 {offsets = [0, 4], sizes = [16, 1], strides = [1, 1]} : vector<16x7xf32> to vector<16x1xf32>
    %45 = vector.broadcast %44 : vector<16x1xf32> to vector<16x128xf32>
    %46 = vector.broadcast %43 : vector<1x128xf32> to vector<16x128xf32>
    %47 = arith.mulf %45, %46 : vector<16x128xf32>
    %48 = arith.addf %41, %47 : vector<16x128xf32>
    %c126_i32 = arith.constant 126 : i32
    %49 = tpu.dynamic_rotate %13 by %c126_i32 dim 1 : vector<1x128xf32>, i32 -> vector<1x128xf32>
    %50 = arith.mulf %49, %9 : vector<1x128xf32>
    %51 = vector.extract_strided_slice %14 {offsets = [0, 5], sizes = [16, 1], strides = [1, 1]} : vector<16x7xf32> to vector<16x1xf32>
    %52 = vector.broadcast %51 : vector<16x1xf32> to vector<16x128xf32>
    %53 = vector.broadcast %50 : vector<1x128xf32> to vector<16x128xf32>
    %54 = arith.mulf %52, %53 : vector<16x128xf32>
    %55 = arith.addf %48, %54 : vector<16x128xf32>
    %c125_i32 = arith.constant 125 : i32
    %56 = tpu.dynamic_rotate %13 by %c125_i32 dim 1 : vector<1x128xf32>, i32 -> vector<1x128xf32>
    %57 = arith.mulf %56, %11 : vector<1x128xf32>
    %58 = vector.extract_strided_slice %14 {offsets = [0, 6], sizes = [16, 1], strides = [1, 1]} : vector<16x7xf32> to vector<16x1xf32>
    %59 = vector.broadcast %58 : vector<16x1xf32> to vector<16x128xf32>
    %60 = vector.broadcast %57 : vector<1x128xf32> to vector<16x128xf32>
    %61 = arith.mulf %59, %60 : vector<16x128xf32>
    %62 = arith.addf %55, %61 : vector<16x128xf32>
    %c0_17 = arith.constant 0 : index
    %c0_18 = arith.constant 0 : index
    %63 = vector.load %arg4[%c0_17, %c0_18] : memref<16x1xf32, #tpu.memory_space<vmem>>, vector<16x1xf32>
    %64 = vector.broadcast %63 : vector<16x1xf32> to vector<16x128xf32>
    %65 = arith.addf %62, %64 : vector<16x128xf32>
    %cst_19 = arith.constant 0.000000e+00 : f32
    %66 = vector.broadcast %cst_19 : f32 to vector<16x128xf32>
    %67 = arith.maximumf %65, %66 : vector<16x128xf32>
    %c0_20 = arith.constant 0 : index
    %c0_21 = arith.constant 0 : index
    %c0_22 = arith.constant 0 : index
    %68 = vector.load %arg5[%c0_20, %c0_21, %c0_22] : memref<5x32x16xf32, #tpu.memory_space<vmem>>, vector<5x32x16xf32>
    %69 = arith.truncf %68 : vector<5x32x16xf32> to vector<5x32x16xbf16>
    %cst_23 = arith.constant 0.000000e+00 : f32
    %70 = vector.broadcast %cst_23 : f32 to vector<32x128xf32>
    %c2_i32_24 = arith.constant 2 : i32
    %71 = tpu.dynamic_rotate %67 by %c2_i32_24 dim 1 : vector<16x128xf32>, i32 -> vector<16x128xf32>
    %72 = vector.broadcast %3 : vector<1x128xf32> to vector<16x128xf32>
    %73 = arith.mulf %71, %72 : vector<16x128xf32>
    %74 = vector.extract_strided_slice %69 {offsets = [0, 0, 0], sizes = [1, 32, 16], strides = [1, 1, 1]} : vector<5x32x16xbf16> to vector<1x32x16xbf16>
    %75 = vector.shape_cast %74 : vector<1x32x16xbf16> to vector<32x16xbf16>
    %76 = arith.truncf %73 : vector<16x128xf32> to vector<16x128xbf16>
    %cst_25 = arith.constant dense<0.000000e+00> : vector<32x128xf32>
    %77 = tpu.matmul %75, %76, %cst_25 {dimension_numbers = #tpu.dot_dimension_numbers<[1], [0], [0], [1], [0, 0, 1, 1], [], []>} : vector<32x16xbf16>, vector<16x128xbf16>, vector<32x128xf32> -> vector<32x128xf32>
    %78 = arith.addf %70, %77 : vector<32x128xf32>
    %c1_i32_26 = arith.constant 1 : i32
    %79 = tpu.dynamic_rotate %67 by %c1_i32_26 dim 1 : vector<16x128xf32>, i32 -> vector<16x128xf32>
    %80 = vector.broadcast %5 : vector<1x128xf32> to vector<16x128xf32>
    %81 = arith.mulf %79, %80 : vector<16x128xf32>
    %82 = vector.extract_strided_slice %69 {offsets = [1, 0, 0], sizes = [1, 32, 16], strides = [1, 1, 1]} : vector<5x32x16xbf16> to vector<1x32x16xbf16>
    %83 = vector.shape_cast %82 : vector<1x32x16xbf16> to vector<32x16xbf16>
    %84 = arith.truncf %81 : vector<16x128xf32> to vector<16x128xbf16>
    %cst_27 = arith.constant dense<0.000000e+00> : vector<32x128xf32>
    %85 = tpu.matmul %83, %84, %cst_27 {dimension_numbers = #tpu.dot_dimension_numbers<[1], [0], [0], [1], [0, 0, 1, 1], [], []>} : vector<32x16xbf16>, vector<16x128xbf16>, vector<32x128xf32> -> vector<32x128xf32>
    %86 = arith.addf %78, %85 : vector<32x128xf32>
    %87 = vector.extract_strided_slice %69 {offsets = [2, 0, 0], sizes = [1, 32, 16], strides = [1, 1, 1]} : vector<5x32x16xbf16> to vector<1x32x16xbf16>
    %88 = vector.shape_cast %87 : vector<1x32x16xbf16> to vector<32x16xbf16>
    %89 = arith.truncf %67 : vector<16x128xf32> to vector<16x128xbf16>
    %cst_28 = arith.constant dense<0.000000e+00> : vector<32x128xf32>
    %90 = tpu.matmul %88, %89, %cst_28 {dimension_numbers = #tpu.dot_dimension_numbers<[1], [0], [0], [1], [0, 0, 1, 1], [], []>} : vector<32x16xbf16>, vector<16x128xbf16>, vector<32x128xf32> -> vector<32x128xf32>
    %91 = arith.addf %86, %90 : vector<32x128xf32>
    %c127_i32_29 = arith.constant 127 : i32
    %92 = tpu.dynamic_rotate %67 by %c127_i32_29 dim 1 : vector<16x128xf32>, i32 -> vector<16x128xf32>
    %93 = vector.broadcast %7 : vector<1x128xf32> to vector<16x128xf32>
    %94 = arith.mulf %92, %93 : vector<16x128xf32>
    %95 = vector.extract_strided_slice %69 {offsets = [3, 0, 0], sizes = [1, 32, 16], strides = [1, 1, 1]} : vector<5x32x16xbf16> to vector<1x32x16xbf16>
    %96 = vector.shape_cast %95 : vector<1x32x16xbf16> to vector<32x16xbf16>
    %97 = arith.truncf %94 : vector<16x128xf32> to vector<16x128xbf16>
    %cst_30 = arith.constant dense<0.000000e+00> : vector<32x128xf32>
    %98 = tpu.matmul %96, %97, %cst_30 {dimension_numbers = #tpu.dot_dimension_numbers<[1], [0], [0], [1], [0, 0, 1, 1], [], []>} : vector<32x16xbf16>, vector<16x128xbf16>, vector<32x128xf32> -> vector<32x128xf32>
    %99 = arith.addf %91, %98 : vector<32x128xf32>
    %c126_i32_31 = arith.constant 126 : i32
    %100 = tpu.dynamic_rotate %67 by %c126_i32_31 dim 1 : vector<16x128xf32>, i32 -> vector<16x128xf32>
    %101 = vector.broadcast %9 : vector<1x128xf32> to vector<16x128xf32>
    %102 = arith.mulf %100, %101 : vector<16x128xf32>
    %103 = vector.extract_strided_slice %69 {offsets = [4, 0, 0], sizes = [1, 32, 16], strides = [1, 1, 1]} : vector<5x32x16xbf16> to vector<1x32x16xbf16>
    %104 = vector.shape_cast %103 : vector<1x32x16xbf16> to vector<32x16xbf16>
    %105 = arith.truncf %102 : vector<16x128xf32> to vector<16x128xbf16>
    %cst_32 = arith.constant dense<0.000000e+00> : vector<32x128xf32>
    %106 = tpu.matmul %104, %105, %cst_32 {dimension_numbers = #tpu.dot_dimension_numbers<[1], [0], [0], [1], [0, 0, 1, 1], [], []>} : vector<32x16xbf16>, vector<16x128xbf16>, vector<32x128xf32> -> vector<32x128xf32>
    %107 = arith.addf %99, %106 : vector<32x128xf32>
    %c0_33 = arith.constant 0 : index
    %c0_34 = arith.constant 0 : index
    %108 = vector.load %arg6[%c0_33, %c0_34] : memref<32x1xf32, #tpu.memory_space<vmem>>, vector<32x1xf32>
    %109 = vector.broadcast %108 : vector<32x1xf32> to vector<32x128xf32>
    %110 = arith.addf %107, %109 : vector<32x128xf32>
    %cst_35 = arith.constant 0.000000e+00 : f32
    %111 = vector.broadcast %cst_35 : f32 to vector<32x128xf32>
    %112 = arith.maximumf %110, %111 : vector<32x128xf32>
    %c0_36 = arith.constant 0 : index
    %c0_37 = arith.constant 0 : index
    %c0_38 = arith.constant 0 : index
    %113 = vector.load %arg7[%c0_36, %c0_37, %c0_38] : memref<3x64x32xf32, #tpu.memory_space<vmem>>, vector<3x64x32xf32>
    %114 = arith.truncf %113 : vector<3x64x32xf32> to vector<3x64x32xbf16>
    %cst_39 = arith.constant 0.000000e+00 : f32
    %115 = vector.broadcast %cst_39 : f32 to vector<64x128xf32>
    %c1_i32_40 = arith.constant 1 : i32
    %116 = tpu.dynamic_rotate %112 by %c1_i32_40 dim 1 : vector<32x128xf32>, i32 -> vector<32x128xf32>
    %117 = vector.broadcast %5 : vector<1x128xf32> to vector<32x128xf32>
    %118 = arith.mulf %116, %117 : vector<32x128xf32>
    %119 = vector.extract_strided_slice %114 {offsets = [0, 0, 0], sizes = [1, 64, 32], strides = [1, 1, 1]} : vector<3x64x32xbf16> to vector<1x64x32xbf16>
    %120 = vector.shape_cast %119 : vector<1x64x32xbf16> to vector<64x32xbf16>
    %121 = arith.truncf %118 : vector<32x128xf32> to vector<32x128xbf16>
    %cst_41 = arith.constant dense<0.000000e+00> : vector<64x128xf32>
    %122 = tpu.matmul %120, %121, %cst_41 {dimension_numbers = #tpu.dot_dimension_numbers<[1], [0], [0], [1], [0, 0, 1, 1], [], []>} : vector<64x32xbf16>, vector<32x128xbf16>, vector<64x128xf32> -> vector<64x128xf32>
    %123 = arith.addf %115, %122 : vector<64x128xf32>
    %124 = vector.extract_strided_slice %114 {offsets = [1, 0, 0], sizes = [1, 64, 32], strides = [1, 1, 1]} : vector<3x64x32xbf16> to vector<1x64x32xbf16>
    %125 = vector.shape_cast %124 : vector<1x64x32xbf16> to vector<64x32xbf16>
    %126 = arith.truncf %112 : vector<32x128xf32> to vector<32x128xbf16>
    %cst_42 = arith.constant dense<0.000000e+00> : vector<64x128xf32>
    %127 = tpu.matmul %125, %126, %cst_42 {dimension_numbers = #tpu.dot_dimension_numbers<[1], [0], [0], [1], [0, 0, 1, 1], [], []>} : vector<64x32xbf16>, vector<32x128xbf16>, vector<64x128xf32> -> vector<64x128xf32>
    %128 = arith.addf %123, %127 : vector<64x128xf32>
    %c127_i32_43 = arith.constant 127 : i32
    %129 = tpu.dynamic_rotate %112 by %c127_i32_43 dim 1 : vector<32x128xf32>, i32 -> vector<32x128xf32>
    %130 = vector.broadcast %7 : vector<1x128xf32> to vector<32x128xf32>
    %131 = arith.mulf %129, %130 : vector<32x128xf32>
    %132 = vector.extract_strided_slice %114 {offsets = [2, 0, 0], sizes = [1, 64, 32], strides = [1, 1, 1]} : vector<3x64x32xbf16> to vector<1x64x32xbf16>
    %133 = vector.shape_cast %132 : vector<1x64x32xbf16> to vector<64x32xbf16>
    %134 = arith.truncf %131 : vector<32x128xf32> to vector<32x128xbf16>
    %cst_44 = arith.constant dense<0.000000e+00> : vector<64x128xf32>
    %135 = tpu.matmul %133, %134, %cst_44 {dimension_numbers = #tpu.dot_dimension_numbers<[1], [0], [0], [1], [0, 0, 1, 1], [], []>} : vector<64x32xbf16>, vector<32x128xbf16>, vector<64x128xf32> -> vector<64x128xf32>
    %136 = arith.addf %128, %135 : vector<64x128xf32>
    %c0_45 = arith.constant 0 : index
    %c0_46 = arith.constant 0 : index
    %137 = vector.load %arg8[%c0_45, %c0_46] : memref<64x1xf32, #tpu.memory_space<vmem>>, vector<64x1xf32>
    %138 = vector.broadcast %137 : vector<64x1xf32> to vector<64x128xf32>
    %139 = arith.addf %136, %138 : vector<64x128xf32>
    %cst_47 = arith.constant 0.000000e+00 : f32
    %140 = vector.broadcast %cst_47 : f32 to vector<64x128xf32>
    %141 = arith.maximumf %139, %140 : vector<64x128xf32>
    %142 = arith.truncf %141 : vector<64x128xf32> to vector<64x128xbf16>
    %c0_48 = arith.constant 0 : index
    %c0_49 = arith.constant 0 : index
    %c0_50 = arith.constant 0 : index
    %143 = vector.load %arg9[%c0_48, %c0_49, %c0_50] : memref<3x32x64xf32, #tpu.memory_space<vmem>>, vector<3x32x64xf32>
    %144 = arith.truncf %143 : vector<3x32x64xf32> to vector<3x32x64xbf16>
    %cst_51 = arith.constant 0.000000e+00 : f32
    %145 = vector.broadcast %cst_51 : f32 to vector<32x128xf32>
    %146 = vector.extract_strided_slice %144 {offsets = [0, 0, 0], sizes = [1, 32, 64], strides = [1, 1, 1]} : vector<3x32x64xbf16> to vector<1x32x64xbf16>
    %147 = vector.shape_cast %146 : vector<1x32x64xbf16> to vector<32x64xbf16>
    %cst_52 = arith.constant dense<0.000000e+00> : vector<32x128xf32>
    %148 = tpu.matmul %147, %142, %cst_52 {dimension_numbers = #tpu.dot_dimension_numbers<[1], [0], [0], [1], [0, 0, 1, 1], [], []>} : vector<32x64xbf16>, vector<64x128xbf16>, vector<32x128xf32> -> vector<32x128xf32>
    %c1_i32_53 = arith.constant 1 : i32
    %149 = tpu.dynamic_rotate %148 by %c1_i32_53 dim 1 : vector<32x128xf32>, i32 -> vector<32x128xf32>
    %150 = vector.broadcast %5 : vector<1x128xf32> to vector<32x128xf32>
    %151 = arith.mulf %149, %150 : vector<32x128xf32>
    %152 = arith.addf %145, %151 : vector<32x128xf32>
    %153 = vector.extract_strided_slice %144 {offsets = [1, 0, 0], sizes = [1, 32, 64], strides = [1, 1, 1]} : vector<3x32x64xbf16> to vector<1x32x64xbf16>
    %154 = vector.shape_cast %153 : vector<1x32x64xbf16> to vector<32x64xbf16>
    %cst_54 = arith.constant dense<0.000000e+00> : vector<32x128xf32>
    %155 = tpu.matmul %154, %142, %cst_54 {dimension_numbers = #tpu.dot_dimension_numbers<[1], [0], [0], [1], [0, 0, 1, 1], [], []>} : vector<32x64xbf16>, vector<64x128xbf16>, vector<32x128xf32> -> vector<32x128xf32>
    %156 = arith.addf %152, %155 : vector<32x128xf32>
    %157 = vector.extract_strided_slice %144 {offsets = [2, 0, 0], sizes = [1, 32, 64], strides = [1, 1, 1]} : vector<3x32x64xbf16> to vector<1x32x64xbf16>
    %158 = vector.shape_cast %157 : vector<1x32x64xbf16> to vector<32x64xbf16>
    %cst_55 = arith.constant dense<0.000000e+00> : vector<32x128xf32>
    %159 = tpu.matmul %158, %142, %cst_55 {dimension_numbers = #tpu.dot_dimension_numbers<[1], [0], [0], [1], [0, 0, 1, 1], [], []>} : vector<32x64xbf16>, vector<64x128xbf16>, vector<32x128xf32> -> vector<32x128xf32>
    %c127_i32_56 = arith.constant 127 : i32
    %160 = tpu.dynamic_rotate %159 by %c127_i32_56 dim 1 : vector<32x128xf32>, i32 -> vector<32x128xf32>
    %161 = vector.broadcast %7 : vector<1x128xf32> to vector<32x128xf32>
    %162 = arith.mulf %160, %161 : vector<32x128xf32>
    %163 = arith.addf %156, %162 : vector<32x128xf32>
    %c0_57 = arith.constant 0 : index
    %c0_58 = arith.constant 0 : index
    %164 = vector.load %arg10[%c0_57, %c0_58] : memref<32x1xf32, #tpu.memory_space<vmem>>, vector<32x1xf32>
    %165 = vector.broadcast %164 : vector<32x1xf32> to vector<32x128xf32>
    %166 = arith.addf %163, %165 : vector<32x128xf32>
    %cst_59 = arith.constant 0.000000e+00 : f32
    %167 = vector.broadcast %cst_59 : f32 to vector<32x128xf32>
    %168 = arith.maximumf %166, %167 : vector<32x128xf32>
    %169 = arith.truncf %168 : vector<32x128xf32> to vector<32x128xbf16>
    %c0_60 = arith.constant 0 : index
    %c0_61 = arith.constant 0 : index
    %c0_62 = arith.constant 0 : index
    %170 = vector.load %arg11[%c0_60, %c0_61, %c0_62] : memref<5x16x32xf32, #tpu.memory_space<vmem>>, vector<5x16x32xf32>
    %171 = arith.truncf %170 : vector<5x16x32xf32> to vector<5x16x32xbf16>
    %cst_63 = arith.constant 0.000000e+00 : f32
    %172 = vector.broadcast %cst_63 : f32 to vector<16x128xf32>
    %173 = vector.extract_strided_slice %171 {offsets = [0, 0, 0], sizes = [1, 16, 32], strides = [1, 1, 1]} : vector<5x16x32xbf16> to vector<1x16x32xbf16>
    %174 = vector.shape_cast %173 : vector<1x16x32xbf16> to vector<16x32xbf16>
    %cst_64 = arith.constant dense<0.000000e+00> : vector<16x128xf32>
    %175 = tpu.matmul %174, %169, %cst_64 {dimension_numbers = #tpu.dot_dimension_numbers<[1], [0], [0], [1], [0, 0, 1, 1], [], []>} : vector<16x32xbf16>, vector<32x128xbf16>, vector<16x128xf32> -> vector<16x128xf32>
    %c2_i32_65 = arith.constant 2 : i32
    %176 = tpu.dynamic_rotate %175 by %c2_i32_65 dim 1 : vector<16x128xf32>, i32 -> vector<16x128xf32>
    %177 = vector.broadcast %3 : vector<1x128xf32> to vector<16x128xf32>
    %178 = arith.mulf %176, %177 : vector<16x128xf32>
    %179 = arith.addf %172, %178 : vector<16x128xf32>
    %180 = vector.extract_strided_slice %171 {offsets = [1, 0, 0], sizes = [1, 16, 32], strides = [1, 1, 1]} : vector<5x16x32xbf16> to vector<1x16x32xbf16>
    %181 = vector.shape_cast %180 : vector<1x16x32xbf16> to vector<16x32xbf16>
    %cst_66 = arith.constant dense<0.000000e+00> : vector<16x128xf32>
    %182 = tpu.matmul %181, %169, %cst_66 {dimension_numbers = #tpu.dot_dimension_numbers<[1], [0], [0], [1], [0, 0, 1, 1], [], []>} : vector<16x32xbf16>, vector<32x128xbf16>, vector<16x128xf32> -> vector<16x128xf32>
    %c1_i32_67 = arith.constant 1 : i32
    %183 = tpu.dynamic_rotate %182 by %c1_i32_67 dim 1 : vector<16x128xf32>, i32 -> vector<16x128xf32>
    %184 = vector.broadcast %5 : vector<1x128xf32> to vector<16x128xf32>
    %185 = arith.mulf %183, %184 : vector<16x128xf32>
    %186 = arith.addf %179, %185 : vector<16x128xf32>
    %187 = vector.extract_strided_slice %171 {offsets = [2, 0, 0], sizes = [1, 16, 32], strides = [1, 1, 1]} : vector<5x16x32xbf16> to vector<1x16x32xbf16>
    %188 = vector.shape_cast %187 : vector<1x16x32xbf16> to vector<16x32xbf16>
    %cst_68 = arith.constant dense<0.000000e+00> : vector<16x128xf32>
    %189 = tpu.matmul %188, %169, %cst_68 {dimension_numbers = #tpu.dot_dimension_numbers<[1], [0], [0], [1], [0, 0, 1, 1], [], []>} : vector<16x32xbf16>, vector<32x128xbf16>, vector<16x128xf32> -> vector<16x128xf32>
    %190 = arith.addf %186, %189 : vector<16x128xf32>
    %191 = vector.extract_strided_slice %171 {offsets = [3, 0, 0], sizes = [1, 16, 32], strides = [1, 1, 1]} : vector<5x16x32xbf16> to vector<1x16x32xbf16>
    %192 = vector.shape_cast %191 : vector<1x16x32xbf16> to vector<16x32xbf16>
    %cst_69 = arith.constant dense<0.000000e+00> : vector<16x128xf32>
    %193 = tpu.matmul %192, %169, %cst_69 {dimension_numbers = #tpu.dot_dimension_numbers<[1], [0], [0], [1], [0, 0, 1, 1], [], []>} : vector<16x32xbf16>, vector<32x128xbf16>, vector<16x128xf32> -> vector<16x128xf32>
    %c127_i32_70 = arith.constant 127 : i32
    %194 = tpu.dynamic_rotate %193 by %c127_i32_70 dim 1 : vector<16x128xf32>, i32 -> vector<16x128xf32>
    %195 = vector.broadcast %7 : vector<1x128xf32> to vector<16x128xf32>
    %196 = arith.mulf %194, %195 : vector<16x128xf32>
    %197 = arith.addf %190, %196 : vector<16x128xf32>
    %198 = vector.extract_strided_slice %171 {offsets = [4, 0, 0], sizes = [1, 16, 32], strides = [1, 1, 1]} : vector<5x16x32xbf16> to vector<1x16x32xbf16>
    %199 = vector.shape_cast %198 : vector<1x16x32xbf16> to vector<16x32xbf16>
    %cst_71 = arith.constant dense<0.000000e+00> : vector<16x128xf32>
    %200 = tpu.matmul %199, %169, %cst_71 {dimension_numbers = #tpu.dot_dimension_numbers<[1], [0], [0], [1], [0, 0, 1, 1], [], []>} : vector<16x32xbf16>, vector<32x128xbf16>, vector<16x128xf32> -> vector<16x128xf32>
    %c126_i32_72 = arith.constant 126 : i32
    %201 = tpu.dynamic_rotate %200 by %c126_i32_72 dim 1 : vector<16x128xf32>, i32 -> vector<16x128xf32>
    %202 = vector.broadcast %9 : vector<1x128xf32> to vector<16x128xf32>
    %203 = arith.mulf %201, %202 : vector<16x128xf32>
    %204 = arith.addf %197, %203 : vector<16x128xf32>
    %c0_73 = arith.constant 0 : index
    %c0_74 = arith.constant 0 : index
    %205 = vector.load %arg12[%c0_73, %c0_74] : memref<16x1xf32, #tpu.memory_space<vmem>>, vector<16x1xf32>
    %206 = vector.broadcast %205 : vector<16x1xf32> to vector<16x128xf32>
    %207 = arith.addf %204, %206 : vector<16x128xf32>
    %cst_75 = arith.constant 0.000000e+00 : f32
    %208 = vector.broadcast %cst_75 : f32 to vector<16x128xf32>
    %209 = arith.maximumf %207, %208 : vector<16x128xf32>
    %210 = arith.truncf %209 : vector<16x128xf32> to vector<16x128xbf16>
    %c0_76 = arith.constant 0 : index
    %c0_77 = arith.constant 0 : index
    %211 = vector.load %arg13[%c0_76, %c0_77] : memref<7x16xf32, #tpu.memory_space<vmem>>, vector<7x16xf32>
    %212 = arith.truncf %211 : vector<7x16xf32> to vector<7x16xbf16>
    %cst_78 = arith.constant dense<0.000000e+00> : vector<7x128xf32>
    %213 = tpu.matmul %212, %210, %cst_78 {dimension_numbers = #tpu.dot_dimension_numbers<[1], [0], [0], [1], [0, 0, 1, 1], [], []>} : vector<7x16xbf16>, vector<16x128xbf16>, vector<7x128xf32> -> vector<7x128xf32>
    %cst_79 = arith.constant 0.000000e+00 : f32
    %214 = vector.broadcast %cst_79 : f32 to vector<1x128xf32>
    %215 = vector.extract_strided_slice %213 {offsets = [0, 0], sizes = [1, 128], strides = [1, 1]} : vector<7x128xf32> to vector<1x128xf32>
    %c3_i32_80 = arith.constant 3 : i32
    %216 = tpu.dynamic_rotate %215 by %c3_i32_80 dim 1 : vector<1x128xf32>, i32 -> vector<1x128xf32>
    %217 = arith.mulf %216, %1 : vector<1x128xf32>
    %218 = arith.addf %214, %217 : vector<1x128xf32>
    %219 = vector.extract_strided_slice %213 {offsets = [1, 0], sizes = [1, 128], strides = [1, 1]} : vector<7x128xf32> to vector<1x128xf32>
    %c2_i32_81 = arith.constant 2 : i32
    %220 = tpu.dynamic_rotate %219 by %c2_i32_81 dim 1 : vector<1x128xf32>, i32 -> vector<1x128xf32>
    %221 = arith.mulf %220, %3 : vector<1x128xf32>
    %222 = arith.addf %218, %221 : vector<1x128xf32>
    %223 = vector.extract_strided_slice %213 {offsets = [2, 0], sizes = [1, 128], strides = [1, 1]} : vector<7x128xf32> to vector<1x128xf32>
    %c1_i32_82 = arith.constant 1 : i32
    %224 = tpu.dynamic_rotate %223 by %c1_i32_82 dim 1 : vector<1x128xf32>, i32 -> vector<1x128xf32>
    %225 = arith.mulf %224, %5 : vector<1x128xf32>
    %226 = arith.addf %222, %225 : vector<1x128xf32>
    %227 = vector.extract_strided_slice %213 {offsets = [3, 0], sizes = [1, 128], strides = [1, 1]} : vector<7x128xf32> to vector<1x128xf32>
    %228 = arith.addf %226, %227 : vector<1x128xf32>
    %229 = vector.extract_strided_slice %213 {offsets = [4, 0], sizes = [1, 128], strides = [1, 1]} : vector<7x128xf32> to vector<1x128xf32>
    %c127_i32_83 = arith.constant 127 : i32
    %230 = tpu.dynamic_rotate %229 by %c127_i32_83 dim 1 : vector<1x128xf32>, i32 -> vector<1x128xf32>
    %231 = arith.mulf %230, %7 : vector<1x128xf32>
    %232 = arith.addf %228, %231 : vector<1x128xf32>
    %233 = vector.extract_strided_slice %213 {offsets = [5, 0], sizes = [1, 128], strides = [1, 1]} : vector<7x128xf32> to vector<1x128xf32>
    %c126_i32_84 = arith.constant 126 : i32
    %234 = tpu.dynamic_rotate %233 by %c126_i32_84 dim 1 : vector<1x128xf32>, i32 -> vector<1x128xf32>
    %235 = arith.mulf %234, %9 : vector<1x128xf32>
    %236 = arith.addf %232, %235 : vector<1x128xf32>
    %237 = vector.extract_strided_slice %213 {offsets = [6, 0], sizes = [1, 128], strides = [1, 1]} : vector<7x128xf32> to vector<1x128xf32>
    %c125_i32_85 = arith.constant 125 : i32
    %238 = tpu.dynamic_rotate %237 by %c125_i32_85 dim 1 : vector<1x128xf32>, i32 -> vector<1x128xf32>
    %239 = arith.mulf %238, %11 : vector<1x128xf32>
    %240 = arith.addf %236, %239 : vector<1x128xf32>
    %c0_86 = arith.constant 0 : index
    %c0_87 = arith.constant 0 : index
    %241 = vector.load %arg14[%c0_86, %c0_87] : memref<1x1xf32, #tpu.memory_space<vmem>>, vector<1x1xf32>
    %242 = vector.broadcast %241 : vector<1x1xf32> to vector<1x128xf32>
    %243 = arith.addf %240, %242 : vector<1x128xf32>
    %c0_88 = arith.constant 0 : index
    %c0_89 = arith.constant 0 : index
    %c0_90 = arith.constant 0 : index
    %244 = vector.load %arg15[%c0_88, %c0_89, %c0_90] : memref<1x1x128xf32, #tpu.memory_space<vmem>>, vector<1x1x128xf32>
    %245 = vector.shape_cast %244 : vector<1x1x128xf32> to vector<1x128xf32>
    %246 = vector.shape_cast %243 : vector<1x128xf32> to vector<1x1x128xf32>
    tpu.vector_store %arg15[%c0_88, %c0_89, %c0_90], %246 {strides = array<i32>} : memref<1x1x128xf32, #tpu.memory_space<vmem>>, vector<1x1x128xf32>,
    return
  }
  func.func @transform_0(%arg0: i32) -> (i32, i32, i32) {
    %c0_i32 = arith.constant 0 : i32
    %c0_i32_0 = arith.constant 0 : i32
    %c0_i32_1 = arith.constant 0 : i32
    return %arg0, %c0_i32, %c0_i32_0 : i32, i32, i32
  }
  func.func @transform_1(%arg0: i32) -> (i32, i32, i32) {
    %c0_i32 = arith.constant 0 : i32
    %c0_i32_0 = arith.constant 0 : i32
    %c0_i32_1 = arith.constant 0 : i32
    %c0_i32_2 = arith.constant 0 : i32
    return %c0_i32, %c0_i32_0, %c0_i32_1 : i32, i32, i32
  }
  func.func @transform_2(%arg0: i32) -> (i32, i32) {
    %c0_i32 = arith.constant 0 : i32
    %c0_i32_0 = arith.constant 0 : i32
    %c0_i32_1 = arith.constant 0 : i32
    return %c0_i32, %c0_i32_0 : i32, i32
  }
  func.func @transform_3(%arg0: i32) -> (i32, i32) {
    %c0_i32 = arith.constant 0 : i32
    %c0_i32_0 = arith.constant 0 : i32
    %c0_i32_1 = arith.constant 0 : i32
    return %c0_i32, %c0_i32_0 : i32, i32
  }
  func.func @transform_4(%arg0: i32) -> (i32, i32, i32) {
    %c0_i32 = arith.constant 0 : i32
    %c0_i32_0 = arith.constant 0 : i32
    %c0_i32_1 = arith.constant 0 : i32
    %c0_i32_2 = arith.constant 0 : i32
    return %c0_i32, %c0_i32_0, %c0_i32_1 : i32, i32, i32
  }
  func.func @transform_5(%arg0: i32) -> (i32, i32) {
    %c0_i32 = arith.constant 0 : i32
    %c0_i32_0 = arith.constant 0 : i32
    %c0_i32_1 = arith.constant 0 : i32
    return %c0_i32, %c0_i32_0 : i32, i32
  }
  func.func @transform_6(%arg0: i32) -> (i32, i32, i32) {
    %c0_i32 = arith.constant 0 : i32
    %c0_i32_0 = arith.constant 0 : i32
    %c0_i32_1 = arith.constant 0 : i32
    %c0_i32_2 = arith.constant 0 : i32
    return %c0_i32, %c0_i32_0, %c0_i32_1 : i32, i32, i32
  }
  func.func @transform_7(%arg0: i32) -> (i32, i32) {
    %c0_i32 = arith.constant 0 : i32
    %c0_i32_0 = arith.constant 0 : i32
    %c0_i32_1 = arith.constant 0 : i32
    return %c0_i32, %c0_i32_0 : i32, i32
  }
  func.func @transform_8(%arg0: i32) -> (i32, i32, i32) {
    %c0_i32 = arith.constant 0 : i32
    %c0_i32_0 = arith.constant 0 : i32
    %c0_i32_1 = arith.constant 0 : i32
    %c0_i32_2 = arith.constant 0 : i32
    return %c0_i32, %c0_i32_0, %c0_i32_1 : i32, i32, i32
  }
  func.func @transform_9(%arg0: i32) -> (i32, i32) {
    %c0_i32 = arith.constant 0 : i32
    %c0_i32_0 = arith.constant 0 : i32
    %c0_i32_1 = arith.constant 0 : i32
    return %c0_i32, %c0_i32_0 : i32, i32
  }
  func.func @transform_10(%arg0: i32) -> (i32, i32, i32) {
    %c0_i32 = arith.constant 0 : i32
    %c0_i32_0 = arith.constant 0 : i32
    %c0_i32_1 = arith.constant 0 : i32
    %c0_i32_2 = arith.constant 0 : i32
    return %c0_i32, %c0_i32_0, %c0_i32_1 : i32, i32, i32
  }
  func.func @transform_11(%arg0: i32) -> (i32, i32) {
    %c0_i32 = arith.constant 0 : i32
    %c0_i32_0 = arith.constant 0 : i32
    %c0_i32_1 = arith.constant 0 : i32
    return %c0_i32, %c0_i32_0 : i32, i32
  }
  func.func @transform_12(%arg0: i32) -> (i32, i32) {
    %c0_i32 = arith.constant 0 : i32
    %c0_i32_0 = arith.constant 0 : i32
    %c0_i32_1 = arith.constant 0 : i32
    return %c0_i32, %c0_i32_0 : i32, i32
  }
  func.func @transform_13(%arg0: i32) -> (i32, i32) {
    %c0_i32 = arith.constant 0 : i32
    %c0_i32_0 = arith.constant 0 : i32
    %c0_i32_1 = arith.constant 0 : i32
    return %c0_i32, %c0_i32_0 : i32, i32
  }
  func.func @transform_14(%arg0: i32) -> (i32, i32, i32) {
    %c0_i32 = arith.constant 0 : i32
    %c0_i32_0 = arith.constant 0 : i32
    %c0_i32_1 = arith.constant 0 : i32
    return %arg0, %c0_i32, %c0_i32_0 : i32, i32, i32
  }
}

</mosaic_0001>

<bundles_post_ra>
// kernel: cnn_denoiser_forward.1
= control target key start
LH: loop header
LB: loop body
LE: loop exit
PB: predicated region body
PF: predicated region fallthrough
CT: control target
= control target key end

     0   :  { %s3211_s0 = inlined_call_operand.vmem [shape: f32[2,1,128], index: 0, kind: input, shape index: {}]   ;;  %s3212_s1 = inlined_call_operand.vmem [shape: f32[7,1,128], index: 1, kind: input, shape index: {}]   ;;  %s3213_s2 = inlined_call_operand.vmem [shape: f32[16,7], index: 2, kind: input, shape index: {}]   ;;  %s3214_s3 = inlined_call_operand.vmem [shape: f32[16,1], index: 3, kind: input, shape index: {}]   ;;  %s3215_s4 = inlined_call_operand.vmem [shape: f32[5,32,16], index: 4, kind: input, shape index: {}]   ;;  %s3216_s5 = inlined_call_operand.vmem [shape: f32[32,1], index: 5, kind: input, shape index: {}]   ;;  %s3217_s6 = inlined_call_operand.vmem [shape: f32[3,64,32], index: 6, kind: input, shape index: {}]   ;;  %s3218_s7 = inlined_call_operand.vmem [shape: f32[64,1], index: 7, kind: input, shape index: {}]   ;;  %s3219_s8 = inlined_call_operand.vmem [shape: f32[3,32,64], index: 8, kind: input, shape index: {}]   ;;  %s3220_s9 = inlined_call_operand.vmem [shape: f32[32,1], index: 9, kind: input, shape index: {}]   ;;  %s3221_s10 = inlined_call_operand.vmem [shape: f32[5,16,32], index: 10, kind: input, shape index: {}]   ;;  %s3222_s11 = inlined_call_operand.vmem [shape: f32[16,1], index: 11, kind: input, shape index: {}]   ;;  %s3223_s12 = inlined_call_operand.vmem [shape: f32[7,16], index: 12, kind: input, shape index: {}]   ;;  %s3224_s13 = inlined_call_operand.<no memory space> [shape: f32[1,1], index: 13, kind: input, shape index: {}]   ;;  %s3225_s14 = inlined_call_operand.hbm [shape: f32[2,1,128], index: 14, kind: output, shape index: {}]  }
   0x1   :  { %3236 = sst [smem:[#allocation6_spill]] %s3211_s0  ;;  %v19_v0 = vstv %s3224_s13 }
   0x2   :  { %3237 = sst [smem:[#allocation7_spill]] %s3213_s2  ;;  %20 = vst [vmem:[#allocation2] sm:$0x1] %v19_v0 }
   0x3   :  { %3238 = sst [smem:[#allocation8_spill]] %s3214_s3 }
   0x4   :  { %3239 = sst [smem:[#allocation9_spill]] %s3215_s4 }
   0x5   :  { %3240 = sst [smem:[#allocation10_spill]] %s3216_s5 }
   0x6   :  { %21 = vsyncpa [#allocation4], 0 }
   0x7   :  { %23 = vsyncpa [#allocation4 + $0x1], 0  ;;  %s2628_s15 = smov 0   ;;  %s2630_s16 = smov 0  }
   0x8   :  { %s2632_s17 = smov 0   ;;  %s2634_s18 = smov 0  }
   0x9 LB: > { %s2649_s13 = sadd.s32 4294967295, %s2532_s18   ;;  %s2103_s19 = sadd.s32 4294967294, %s2532_s18   ;;  %s2532_s18 = sphi %s2634_s18, %s3257_s18   ;;  %s2528_s17 = sphi %s2632_s17, %s3256_s17   ;;  %s2524_s16 = sphi %s2630_s16, %s3255_s16   ;;  %s2520_s15 = sphi %s2628_s15, %s3254_s15  }
   0xa   : > { %s2653_s20 = sadd.s32 1, %s2532_s18   ;;  %s335_s21 = sadd.s32 1, %s2528_s17 }
   0xb   : > { %s332_s22 = ssub.s32 %s2532_s18, %s2653_s20  ;;  %p345_p0 = scmp.ne.s32.totalorder %s2528_s17, %s2524_s16 }
   0xc   : > { %p333_p1 = scmp.eq.s32.totalorder %s332_s22, 0  ;;  %p346_p2 = scmp.eq.s32.totalorder %s2649_s13, 1 }
   0xd   : > { %p351_p3 = scmp.ne.s32.totalorder %s2524_s16, %s2520_s15  ;;  %p352_p4 = scmp.eq.s32.totalorder %s2103_s19, 1 }
   0xe   : > { %s2664_s23 = scalar_select %p333_p1, %s2528_s17, %s335_s21  }
   0xf   : > { %p2666_p5 = por %p346_p2, %p345_p0  ;;  %p2670_p6 = por %p352_p4, %p351_p3 }
  0x10   : > { %p2106_p7 = scmp.ge.s32.totalorder %s2532_s18, 1  ;;  %p415_p8 = scmp.lt.s32.totalorder %s2532_s18, 3 }
  0x12   : > { %p416_p9 = pnand %p2106_p7, %p415_p8 }
  0x13   : > { %s3243_s2 = sld [smem:[#allocation7_spill]] (!%p416_p9)  ;;  %v2534_v2 = vmov (!%p416_p9), 1   ;;  %v2535_v3 = vmov (!%p416_p9), 0   ;;  %p458_p10 = scmp.lt.s32.totalorder (!%p416_p9), %s2649_s13, 1  ;;  %v2536_v5 = vmov (!%p416_p9), 2   ;;  %v2539_v7 = vmov (!%p416_p9), 3  }
  0x14   : > { %419 = sbr.rel (%p416_p9) target bundleno = 2080 (0x820), region = 76  ;;  %2452 = vset.pattern.permute.xlu1 (!%p416_p9), %v2534_v2  ;;  %2451 = vset.pattern.permute.xlu0 (!%p416_p9), %v2535_v3  ;;  %s3244_s0 = sld [smem:[#allocation6_spill]] (!%p416_p9)  ;;  %v2540_v8 = vmov (!%p416_p9), 4   ;;  %v2543_v9 = vmov (!%p416_p9), 6   ;;  %v2544_v10 = vmov (!%p416_p9), 5   ;;  %v489_v22 = vlaneseq (!%p416_p9) }
  0x15   : > { %s3234_s26 = smov (!%p416_p9), 2   ;;  %s3226_s27 = smov (!%p416_p9), 3   ;;  %v2710_v26 = vld [vmem:[%s3212_s1 + $0x1] sm:$0x1] (!%p416_p9)  ;;  %v462_v27 = vld [vmem:[%s3212_s1] sm:$0x1] (!%p416_p9) }
  0x16   : > { %s3232_s28 = smov (!%p416_p9), 1   ;;  %s3227_s29 = smov (!%p416_p9), 127   ;;  %v490_v24 = vshrl.u32 (!%p416_p9), %v489_v22, 7  ;;  %v2718_v29 = vld [vmem:[%s3212_s1 + $0x2] sm:$0x1] (!%p416_p9)  ;;  %vm682_vm0 = vcmask (!%p416_p9), 130048  }
  0x17   : > { %s3245_s3 = sld [smem:[#allocation8_spill]] (!%p416_p9)  ;;  %s3230_s21 = smov (!%p416_p9), 126   ;;  %v2730_v42 = vld [vmem:[%s3212_s1 + $0x4] sm:$0x1] (!%p416_p9)  ;;  %v2738_v54 = vld [vmem:[%s3212_s1 + $0x5] sm:$0x1] (!%p416_p9) }
  0x18   : > { %v2720_v30 = vsub.s32 (!%p416_p9), 0, %v490_v24  ;;  %v2111_v61 = vld [vmem:[%s3212_s1 + $0x6] sm:$0x1] (!%p416_p9)  ;;  %s3246_s4 = sld [smem:[#allocation9_spill]] (!%p416_p9)  ;;  %s3249_s5 = sld [smem:[#allocation10_spill]] (!%p416_p9)  ;;  %vm1081_vm1 = vcmask (!%p416_p9), 261120  }
  0x19   : > { %v474_v1 = vld [vmem:[%s3243_s2] sm:$0xff] (!%p416_p9)  ;;  %v475_v4 = vld [vmem:[%s3243_s2 + $0x8] sm:$0xff] (!%p416_p9)  ;;  %vm1421_vm2 = vcmask (!%p416_p9), 523264   ;;  %vm2548_vm3 = vmmov (!%p416_p9), 0   ;;  %s3253_s2 = smov (!%p416_p9), 125  }
  0x1a   : > { %501 = vperm.xlu1 (!%p416_p9), %2452, %v474_v1   ;;  %481 = vperm.xlu0 (!%p416_p9), %2451, %v474_v1  }
  0x1b   : > { %s459_s30 = scalar_select %p458_p10, %s2649_s13, 1 }
  0x1d   : > { %s460_s22 = scalar_lea.vmem %s3244_s0, %s459_s30  ;;  %v610_v11 = vld [vmem:[%s3245_s3] sm:$0xff]  ;;  %v611_v12 = vld [vmem:[%s3245_s3 + $0x8] sm:$0xff]  ;;  %s3251_s30 = smov 2  }
  0x1e   : > { %505 = vperm.xlu1 %2452, %v475_v4   ;;  %486 = vperm.xlu0 %2451, %v475_v4   ;;  %v2687_v6 = vld [vmem:[%s460_s22] sm:$0x1]  ;;  %s3229_s22 = smov 125   ;;  %s3252_s0 = smov 3  }
  0x1f   : > { %v547_v50 = vrot.slane %v2687_v6, %v2720_v30  ;;  %s2146_s3 = sshll.u32 %s2649_s13, 4  ;;  %s2549_s13 = smov [#allocation3]  }
  0x20   : > { %s2474_s19 = sshll.u32 %s2549_s13, 4  ;;  %s2475_s19 = int_to_ptr.vmem [resolvable:$false] %s2474_s19 }
  0x22   : > { %2454 = vset.pattern.permute.xlu1 %v2536_v5  ;;  %2453 = vset.pattern.permute.xlu0 %v2536_v5 }
  0x23   : > { %524 = vperm.xlu1 %2454, %v475_v4   ;;  %520 = vperm.xlu0 %2453, %v474_v1  }
  0x27   : > { %497 = vrot.lane.b32.xlu0 %v2687_v6, %s3234_s26  ;;  %476 = vrot.lane.b32.xlu1 %v2687_v6, %s3226_s27  ;;  %s3247_s27 = smov 127  }
  0x28   : > { %2455 = vset.pattern.permute.xlu1 %v2539_v7  ;;  %2456 = vset.pattern.permute.xlu0 %v2539_v7 }
  0x2b   : > { %540 = vperm.xlu0 %2456, %v475_v4   ;;  %536 = vperm.xlu1 %2455, %v474_v1  }
  0x2f   : > { %2458 = vset.pattern.permute.xlu0 %v2540_v8  ;;  %516 = vrot.lane.b32.xlu1 %v2687_v6, %s3232_s28 }
  0x30   : > { %561 = vperm.xlu0 %2458, %v475_v4   ;;  %2457 = vset.pattern.permute.xlu1 %v2540_v8 }
  0x33   : > { %557 = vperm.xlu1 %2457, %v474_v1  }
  0x34   : > { %553 = vrot.lane.b32.xlu0 %v2687_v6, %s3227_s29  ;;  %s3248_s29 = smov 126  }
  0x35   : > { %2461 = vset.pattern.permute.xlu0 %v2543_v9 }
  0x37   : > { %2459 = vset.pattern.permute.xlu1 %v2544_v10 }
  0x38   : > { %576 = vperm.xlu1 %2459, %v474_v1   ;;  %599 = vperm.xlu0 %2461, %v475_v4  }
  0x3c   : > { %580 = vperm.xlu1 %2459, %v475_v4   ;;  %2462 = vset.pattern.permute.xlu0 %v2535_v3 }
  0x3d   : > { %614 = vperm.xlu0 %2462, %v610_v11  }
  0x40   : > { %2460 = vset.pattern.permute.xlu1 %v2543_v9 }
  0x41   : > { %595 = vperm.xlu1 %2460, %v474_v1  }
  0x45   : > { %572 = vrot.lane.b32.xlu1 %v2687_v6, %s3230_s21 }
  0x46   : > { %2463 = vset.pattern.permute.xlu1 %v2535_v3 }
  0x49   : > { %591 = vrot.lane.b32.xlu1 %v2687_v6, %s3229_s22 }
  0x4d   : > { %619 = vperm.xlu1 %2463, %v611_v12  }
  0x99   : > { %v502_v13 = vpop.permute.xlu1 %501  ;;  %v482_v14 = vpop.permute.xlu0 %481 }
  0x9d   : > { %v506_v15 = vpop.permute.xlu1 %505  ;;  %v487_v16 = vpop.permute.xlu0 %486 }
  0xa2   : > { %v525_v17 = vpop.permute.xlu1 %524  ;;  %v521_v18 = vpop.permute.xlu0 %520 }
  0xa6   : > { %v477_v19 = vpop.permute.xlu1 %476  ;;  %v498_v20 = vpop.permute.xlu0 %497 }
  0xa7   : > { %v499_v31 = vmul.f32 %v2710_v26, %v498_v20  ;;  %v478_v32 = vmul.f32 %v477_v19, %v462_v27 }
  0xa9   : > { %v511_v36 = vrot.slane %v499_v31, %v2720_v30  ;;  %v492_v37 = vrot.slane %v478_v32, %v2720_v30  ;;  %v997_v31 = vld [vmem:[%s3249_s5] sm:$0xff]  ;;  %v1000_v32 = vld [vmem:[%s3249_s5 + $0x18] sm:$0xff] }
  0xaa   : > { %v537_v21 = vpop.permute.xlu1 %536  ;;  %v541_v25 = vpop.permute.xlu0 %540 }
  0xab   : > { %v512_v40 = vmul.f32 %v511_v36, %v502_v13  ;;  %v493_v41 = vmul.f32 %v492_v37, %v482_v14  ;;  %v513_v44 = vmul.f32 %v511_v36, %v506_v15  ;;  %v494_v45 = vmul.f32 %v492_v37, %v487_v16  ;;  %v630_v15 = vld [vmem:[%s3246_s4 + $0x20] sm:$0xff]  ;;  %v631_v16 = vld [vmem:[%s3246_s4 + $0x28] sm:$0xff] }
  0xac   : > { %v550_v55 = vmul.f32 %v547_v50, %v541_v25  ;;  %v549_v58 = vmul.f32 %v547_v50, %v537_v21  ;;  %v648_v19 = vpack.c.bf16 %v631_v16, %v630_v15  ;;  %v2780_v37 = vrot.slane %v2710_v26, %v2720_v30  ;;  %v627_v26 = vld [vmem:[%s3246_s4 + $0x8] sm:$0xff]  ;;  %v644_v16 = vld [vmem:[%s3246_s4 + $0x90] sm:$0xff] }
  0xad   : > { %v514_v49 = vadd.f32 %v512_v40, %v493_v41  ;;  %v515_v52 = vadd.f32 %v513_v44, %v494_v45  ;;  %v632_v40 = vld [vmem:[%s3246_s4 + $0x30] sm:$0xff]  ;;  %v633_v41 = vld [vmem:[%s3246_s4 + $0x38] sm:$0xff] }
  0xae   : > { %v517_v23 = vpop.permute.xlu1 %516  ;;  %2219 = vmatprep.mubr.msk.bf16.mxu0 %vm682_vm0, %v648_v19  ;;  %v1037_v19 = vld [vmem:[%s3217_s6 + $0x40] sm:$0xff] }
  0xaf   : > { %v518_v33 = vmul.f32 %v2718_v29, %v517_v23  ;;  %v562_v34 = vpop.permute.xlu0 %561 }
  0xb1   : > { %v530_v38 = vrot.slane %v518_v33, %v2720_v30  ;;  %v999_v33 = vld [vmem:[%s3249_s5 + $0x10] sm:$0xff] }
  0xb2   : > { %v558_v28 = vpop.permute.xlu1 %557 }
  0xb3   : > { %v554_v43 = vpop.permute.xlu0 %553  ;;  %v531_v46 = vmul.f32 %v530_v38, %v521_v18  ;;  %v532_v47 = vmul.f32 %v530_v38, %v525_v17 }
  0xb4   : > { %v555_v48 = vmul.f32 %v2730_v42, %v554_v43  ;;  %v626_v43 = vld [vmem:[%s3246_s4] sm:$0xff] }
  0xb5   : > { %v533_v53 = vadd.f32 %v531_v46, %v514_v49  ;;  %v534_v56 = vadd.f32 %v532_v47, %v515_v52  ;;  %v646_v49 = vpack.c.bf16 %v627_v26, %v626_v43 }
  0xb6   : > { %v567_v57 = vrot.slane %v555_v48, %v2720_v30  ;;  %v649_v48 = vpack.c.bf16 %v633_v41, %v632_v40 }
  0xb7   : > { %v577_v35 = vpop.permute.xlu1 %576  ;;  %v551_v62 = vadd.f32 %v549_v58, %v533_v53  ;;  %v552_v2 = vadd.f32 %v550_v55, %v534_v56  ;;  %v600_v4 = vpop.permute.xlu0 %599  ;;  %v628_v55 = vld [vmem:[%s3246_s4 + $0x10] sm:$0xff]  ;;  %v629_v56 = vld [vmem:[%s3246_s4 + $0x18] sm:$0xff]  ;;  %v635_v58 = vld [vmem:[%s3246_s4 + $0x48] sm:$0xff] }
  0xb8   : > { %v568_v63 = vmul.f32 %v567_v57, %v558_v28  ;;  %v569_v0 = vmul.f32 %v567_v57, %v562_v34  ;;  %v998_v28 = vld [vmem:[%s3249_s5 + $0x8] sm:$0xff]  ;;  %v2776_v34 = vrot.slane %v2718_v29, %v2720_v30  ;;  %v634_v57 = vld [vmem:[%s3246_s4 + $0x40] sm:$0xff] }
  0xba   : > { %v570_v9 = vadd.f32 %v568_v63, %v551_v62  ;;  %v571_v10 = vadd.f32 %v569_v0, %v552_v2  ;;  %v2822_v63 = vrot.slane %v2738_v54, %v2720_v30  ;;  %v636_v2 = vld [vmem:[%s3246_s4 + $0x50] sm:$0xff] }
  0xbb   : > { %v581_v39 = vpop.permute.xlu1 %580 }
  0xbc   : > { %v615_v17 = vpop.permute.xlu0 %614 }
  0xc0   : > { %v596_v51 = vpop.permute.xlu1 %595 }
  0xc4   : > { %v573_v59 = vpop.permute.xlu1 %572 }
  0xc5   : > { %v574_v60 = vmul.f32 %v2738_v54, %v573_v59 }
  0xc7   : > { %v586_v1 = vrot.slane %v574_v60, %v2720_v30  ;;  %v647_v60 = vpack.c.bf16 %v629_v56, %v628_v55  ;;  %v1029_v55 = vld [vmem:[%s3217_s6] sm:$0xff]  ;;  %v1030_v56 = vld [vmem:[%s3217_s6 + $0x8] sm:$0xff] }
  0xc8   : > { %v592_v3 = vpop.permute.xlu1 %591 }
  0xc9   : > { %v587_v5 = vmul.f32 %v586_v1, %v577_v35  ;;  %v588_v6 = vmul.f32 %v586_v1, %v581_v39  ;;  %v593_v7 = vmul.f32 %v2111_v61, %v592_v3  ;;  %v650_v61 = vpack.c.bf16 %v635_v58, %v634_v57  ;;  %v637_v3 = vld [vmem:[%s3246_s4 + $0x58] sm:$0xff]  ;;  %v1336_v57 = vld [vmem:[%s3218_s7 + $0x8] sm:$0xff] }
  0xcb   : > { %v605_v8 = vrot.slane %v593_v7, %v2720_v30  ;;  %v589_v12 = vadd.f32 %v587_v5, %v570_v9  ;;  %v590_v14 = vadd.f32 %v588_v6, %v571_v10  ;;  %v639_v5 = vld [vmem:[%s3246_s4 + $0x68] sm:$0xff]  ;;  %v651_v7 = vpack.c.bf16 %v637_v3, %v636_v2  ;;  %v640_v10 = vld [vmem:[%s3246_s4 + $0x70] sm:$0xff]  ;;  %v1623_v2 = vld [vmem:[%s3220_s9] sm:$0xff] }
  0xcc   : > { %v620_v18 = vpop.permute.xlu1 %619  ;;  %v1624_v3 = vld [vmem:[%s3220_s9 + $0x8] sm:$0xff] }
  0xcd   : > { %v607_v11 = vmul.f32 %v605_v8, %v600_v4  ;;  %v606_v13 = vmul.f32 %v605_v8, %v596_v51  ;;  %v2802_v51 = vrot.slane %v2730_v42, %v2720_v30  ;;  %v638_v4 = vld [vmem:[%s3246_s4 + $0x60] sm:$0xff] }
  0xce   : > { %v652_v8 = vpack.c.bf16 %v639_v5, %v638_v4  ;;  %v1625_v4 = vld [vmem:[%s3220_s9 + $0x10] sm:$0xff]  ;;  %v1626_v5 = vld [vmem:[%s3220_s9 + $0x18] sm:$0xff] }
  0xcf   : > { %v608_v20 = vadd.f32 %v606_v13, %v589_v12  ;;  %v609_v21 = vadd.f32 %v607_v11, %v590_v14  ;;  %v641_v11 = vld [vmem:[%s3246_s4 + $0x78] sm:$0xff]  ;;  %v642_v12 = vld [vmem:[%s3246_s4 + $0x80] sm:$0xff]  ;;  %v643_v13 = vld [vmem:[%s3246_s4 + $0x88] sm:$0xff] }
  0xd0   : > { %v653_v14 = vpack.c.bf16 %v641_v11, %v640_v10  ;;  %v654_v15 = vpack.c.bf16 %v643_v13, %v642_v12 }
  0xd1   : > { %v622_v22 = vadd.f32 %v615_v17, %v608_v20  ;;  %v623_v23 = vadd.f32 %v620_v18, %v609_v21  ;;  %v645_v17 = vld [vmem:[%s3246_s4 + $0x98] sm:$0xff]  ;;  %v1038_v20 = vld [vmem:[%s3217_s6 + $0x48] sm:$0xff] }
  0xd2   : > { %v655_v18 = vpack.c.bf16 %v645_v17, %v644_v16  ;;  %v1057_v21 = vpack.c.bf16 %v1038_v20, %v1037_v19  ;;  %v1032_v16 = vld [vmem:[%s3217_s6 + $0x18] sm:$0xff]  ;;  %v1034_v19 = vld [vmem:[%s3217_s6 + $0x28] sm:$0xff] }
  0xd3   : > { %v624_v24 = vmax.f32 %v622_v22, 0.0  ;;  %v625_v25 = vmax.f32 %v623_v23, 0.0 }
  0xd4   : > { %2251 = vmatprep.mubr.msk.bf16.mxu1 %vm1081_vm1, %v1057_v21 }
  0xd5   : > { %671 = vrot.lane.b32.xlu0 %v625_v25, %s3232_s28  ;;  %669 = vrot.lane.b32.xlu1 %v624_v24, %s3232_s28  ;;  %v793_v27 = vpack.c.bf16 %v625_v25, %v624_v24  ;;  %s2476_s28 = scalar_lea.vmem %s2475_s19, 32 }
  0xd9   : > { %658 = vrot.lane.b32.xlu0 %v625_v25, %s3234_s26  ;;  %656 = vrot.lane.b32.xlu1 %v624_v24, %s3234_s26  ;;  %s3250_s26 = smov 1  }
  0xdd   : > { %855 = vrot.lane.b32.xlu0 %v625_v25, %s3247_s27  ;;  %853 = vrot.lane.b32.xlu1 %v624_v24, %s3247_s27 }
  0xe1   : > { %927 = vrot.lane.b32.xlu0 %v625_v25, %s3248_s29  ;;  %925 = vrot.lane.b32.xlu1 %v624_v24, %s3248_s29 }
  0xe5   : > { %1008 = vperm.xlu0 %2462, %v998_v28   ;;  %1003 = vperm.xlu1 %2463, %v997_v31  }
  0xe9   : > { %1018 = vperm.xlu0 %2462, %v1000_v32   ;;  %1013 = vperm.xlu1 %2463, %v999_v33  }
 0x147   : > { %v672_v35 = vpop.permute.xlu0 %671  ;;  %v670_v36 = vpop.permute.xlu1 %669 }
 0x148   : > { %v680_v38 = vmul.f32 %v2776_v34, %v672_v35  ;;  %v679_v39 = vmul.f32 %v2776_v34, %v670_v36 }
 0x14a   : > { %v681_v29 = vpack.c.bf16 %v680_v38, %v679_v39 }
 0x14b   : > { %v659_v44 = vpop.permute.xlu0 %658  ;;  %v657_v45 = vpop.permute.xlu1 %656 }
 0x14c   : > { %v667_v46 = vmul.f32 %v2780_v37, %v659_v44  ;;  %v666_v47 = vmul.f32 %v2780_v37, %v657_v45  ;;  %2217 = vmatprep.subr.bf16.mxu0 %v681_v29  ;;  %v1039_v44 = vld [vmem:[%s3217_s6 + $0x50] sm:$0xff]  ;;  %v1040_v45 = vld [vmem:[%s3217_s6 + $0x58] sm:$0xff] }
 0x14d   : > { %2218 = vmatpush3.bf16.msra.mxu0 %v681_v29 }
 0x14e   : > { %v668_v50 = vpack.c.bf16 %v667_v46, %v666_v47  ;;  %v1041_v46 = vld [vmem:[%s3217_s6 + $0x60] sm:$0xff]  ;;  %v1042_v47 = vld [vmem:[%s3217_s6 + $0x68] sm:$0xff] }
 0x14f   : > { %v856_v52 = vpop.permute.xlu0 %855  ;;  %v854_v53 = vpop.permute.xlu1 %853 }
 0x150   : > { %2220 = vmatmul.mubr.msk.bf16.vlgmr.msra.gmra.mrb[0].mxu0 %vm682_vm0, %v649_v48  ;;  %2223 = vmatprep.subr.bf16.mxu0 %v668_v50  ;;  %v864_v42 = vmul.f32 %v2802_v51, %v856_v52  ;;  %v863_v59 = vmul.f32 %v2802_v51, %v854_v53  ;;  %v1058_v48 = vpack.c.bf16 %v1040_v45, %v1039_v44  ;;  %v1043_v52 = vld [vmem:[%s3217_s6 + $0x70] sm:$0xff]  ;;  %v1044_v53 = vld [vmem:[%s3217_s6 + $0x78] sm:$0xff]  ;;  %v1050_v44 = vld [vmem:[%s3217_s6 + $0xa8] sm:$0xff] }
 0x151   : > { %2224 = vmatpush3.bf16.msra.mxu0 %v668_v50  ;;  %2225 = vmatprep.mubr.msk.bf16.mxu0 %vm682_vm0, %v646_v49  ;;  %v1059_v49 = vpack.c.bf16 %v1042_v47, %v1041_v46  ;;  %v1335_v50 = vld [vmem:[%s3218_s7] sm:$0xff]  ;;  %v1060_v58 = vpack.c.bf16 %v1044_v53, %v1043_v52  ;;  %v1051_v47 = vld [vmem:[%s3217_s6 + $0xb0] sm:$0xff]  ;;  %v1404_v52 = vld [vmem:[%s3219_s8 + $0x8] sm:$0xff] }
 0x152   : > { %2229 = vmatprep.subr.bf16.mxu0 %v793_v27  ;;  %v865_v62 = vpack.c.bf16 %v864_v42, %v863_v59  ;;  %v1337_v42 = vld [vmem:[%s3218_s7 + $0x10] sm:$0xff]  ;;  %v1053_v59 = vpack.c.bf16 %v1030_v56, %v1029_v55  ;;  %v1407_v55 = vld [vmem:[%s3219_s8 + $0x20] sm:$0xff]  ;;  %v1408_v56 = vld [vmem:[%s3219_s8 + $0x28] sm:$0xff] }
 0x153   : > { %v928_v0 = vpop.permute.xlu0 %927  ;;  %v926_v1 = vpop.permute.xlu1 %925 }
 0x154   : > { %v936_v54 = vmul.f32 %v2822_v63, %v928_v0  ;;  %v935_v6 = vmul.f32 %v2822_v63, %v926_v1  ;;  %v1341_v0 = vld [vmem:[%s3218_s7 + $0x30] sm:$0xff]  ;;  %v1342_v1 = vld [vmem:[%s3218_s7 + $0x38] sm:$0xff] }
 0x156   : > { %v937_v9 = vpack.c.bf16 %v936_v54, %v935_v6 }
 0x15c   : > { %2226 = vmatmul.mubr.msk.bf16.vlgmr.msra.gmra.mrb[0].mxu0 %vm682_vm0, %v647_v60  ;;  %v1338_v60 = vld [vmem:[%s3218_s7 + $0x18] sm:$0xff] }
 0x15d   : > { %2230 = vmatpush3.bf16.msra.mxu0 %v793_v27  ;;  %2231 = vmatprep.mubr.msk.bf16.mxu0 %vm682_vm0, %v650_v61  ;;  %v1339_v61 = vld [vmem:[%s3218_s7 + $0x20] sm:$0xff] }
 0x15e   : > { %2235 = vmatprep.subr.bf16.mxu0 %v865_v62 }
 0x164   : > { %v1004_v22 = vpop.permute.xlu1 %1003  ;;  %v1009_v23 = vpop.permute.xlu0 %1008 }
 0x168   : > { %2232 = vmatmul.mubr.msk.bf16.vlgmr.msra.gmra.mrb[0].mxu0 %vm682_vm0, %v651_v7  ;;  %v1014_v24 = vpop.permute.xlu1 %1013  ;;  %v1019_v31 = vpop.permute.xlu0 %1018 }
 0x169   : > { %2236 = vmatpush3.bf16.msra.mxu0 %v865_v62  ;;  %2237 = vmatprep.mubr.msk.bf16.mxu0 %vm682_vm0, %v652_v8  ;;  %v1340_v62 = vld [vmem:[%s3218_s7 + $0x28] sm:$0xff] }
 0x16a   : > { %2241 = vmatprep.subr.bf16.mxu0 %v937_v9 }
 0x174   : > { %2238 = vmatmul.mubr.msk.bf16.vlgmr.msra.gmra.mrb[0].mxu0 %vm682_vm0, %v653_v14 }
 0x175   : > { %2242 = vmatpush3.bf16.msra.mxu0 %v937_v9  ;;  %2243 = vmatprep.mubr.msk.bf16.mxu0 %vm682_vm0, %v654_v15  ;;  %v1031_v15 = vld [vmem:[%s3217_s6 + $0x10] sm:$0xff] }
 0x180   : > { %2244 = vmatmul.mubr.msk.bf16.vlgmr.msra.gmra.mrb[0].mxu0 %vm682_vm0, %v655_v18  ;;  %v1033_v18 = vld [vmem:[%s3217_s6 + $0x20] sm:$0xff] }
 0x253   : > { %v2245_v25 = vpop.f32.mrb[0].mxu0 }
 0x254   : > { %v1023_v27 = vadd.f32 %v2245_v25, %v1014_v24  ;;  %v978_v28 = vpop.f32.mrb[1].mxu0  ;;  %v1055_v25 = vpack.c.bf16 %v1034_v19, %v1033_v18 }
 0x255   : > { %v1021_v32 = vadd.f32 %v1004_v22, %v978_v28  ;;  %v2246_v33 = vpop.f32.mrb[2].mxu0 }
 0x256   : > { %v1024_v35 = vadd.f32 %v2246_v33, %v1019_v31  ;;  %v981_v36 = vpop.f32.mrb[3].mxu0  ;;  %v1027_v40 = vmax.f32 %v1023_v27, 0.0  ;;  %v1035_v33 = vld [vmem:[%s3217_s6 + $0x30] sm:$0xff] }
 0x257   : > { %v1025_v38 = vmax.f32 %v1021_v32, 0.0  ;;  %v1022_v39 = vadd.f32 %v1009_v23, %v981_v36  ;;  %v1054_v23 = vpack.c.bf16 %v1032_v16, %v1031_v15 }
 0x258   : > { %v1028_v41 = vmax.f32 %v1024_v35, 0.0  ;;  %v1036_v35 = vld [vmem:[%s3217_s6 + $0x38] sm:$0xff] }
 0x259   : > { %v1026_v29 = vmax.f32 %v1022_v39, 0.0  ;;  %1065 = vrot.lane.b32.xlu1 %v1025_v38, %s3250_s26  ;;  %v1046_v39 = vld [vmem:[%s3217_s6 + $0x88] sm:$0xff] }
 0x25a   : > { %v1080_v43 = vpack.c.bf16 %v1028_v41, %v1027_v40 }
 0x25b   : > { %1067 = vrot.lane.b32.xlu0 %v1026_v29, %s3250_s26  ;;  %v1079_v26 = vpack.c.bf16 %v1026_v29, %v1025_v38 }
 0x25d   : > { %1069 = vrot.lane.b32.xlu1 %v1027_v40, %s3250_s26  ;;  %2247 = vmatprep.subr.bf16.mxu1 %v1079_v26 }
 0x25e   : > { %2248 = vmatpush3.bf16.msra.mxu1 %v1079_v26  ;;  %v1049_v26 = vld [vmem:[%s3217_s6 + $0xa0] sm:$0xff] }
 0x25f   : > { %1071 = vrot.lane.b32.xlu0 %v1028_v41, %s3250_s26  ;;  %2249 = vmatprep.subr.bf16.mxu1 %v1080_v43  ;;  %v1063_v46 = vpack.c.bf16 %v1050_v44, %v1049_v26  ;;  %v1414_v26 = vld [vmem:[%s3219_s8 + $0x58] sm:$0xff] }
 0x261   : > { %1236 = vrot.lane.b32.xlu1 %v1025_v38, %s3247_s27  ;;  %v1045_v38 = vld [vmem:[%s3217_s6 + $0x80] sm:$0xff] }
 0x262   : > { %2250 = vmatpush3.bf16.msra.mxu1 %v1080_v43  ;;  %v1048_v43 = vld [vmem:[%s3217_s6 + $0x98] sm:$0xff] }
 0x263   : > { %1238 = vrot.lane.b32.xlu0 %v1026_v29, %s3247_s27  ;;  %v1047_v29 = vld [vmem:[%s3217_s6 + $0x90] sm:$0xff] }
 0x264   : > { %v1062_v45 = vpack.c.bf16 %v1048_v43, %v1047_v29  ;;  %v1413_v43 = vld [vmem:[%s3219_s8 + $0x50] sm:$0xff] }
 0x265   : > { %1240 = vrot.lane.b32.xlu1 %v1027_v40, %s3247_s27  ;;  %2252 = vmatmul.mubr.msk.bf16.vlgmr.msra.gmra.mrb[0].mxu1 %vm1081_vm1, %v1058_v48  ;;  %v1056_v40 = vpack.c.bf16 %v1036_v35, %v1035_v33  ;;  %v1052_v48 = vld [vmem:[%s3217_s6 + $0xb8] sm:$0xff]  ;;  %v1409_v35 = vld [vmem:[%s3219_s8 + $0x30] sm:$0xff]  ;;  %v1420_v44 = vpack.c.bf16 %v1414_v26, %v1413_v43 }
 0x266   : > { %2255 = vmatprep.mubr.msk.bf16.mxu1 %vm1081_vm1, %v1059_v49  ;;  %v1064_v49 = vpack.c.bf16 %v1052_v48, %v1051_v47  ;;  %v1406_v33 = vld [vmem:[%s3219_s8 + $0x18] sm:$0xff] }
 0x267   : > { %1242 = vrot.lane.b32.xlu0 %v1028_v41, %s3247_s27  ;;  %v1061_v41 = vpack.c.bf16 %v1046_v39, %v1045_v38  ;;  %v1411_v38 = vld [vmem:[%s3219_s8 + $0x40] sm:$0xff]  ;;  %v1412_v39 = vld [vmem:[%s3219_s8 + $0x48] sm:$0xff] }
 0x268   : > { %v1419_v29 = vpack.c.bf16 %v1412_v39, %v1411_v38 }
 0x269   : > { %1345 = vperm.xlu1 %2463, %v1335_v50   ;;  %v1403_v50 = vld [vmem:[%s3219_s8] sm:$0xff] }
 0x26a   : > { %v1415_v53 = vpack.c.bf16 %v1404_v52, %v1403_v50 }
 0x26b   : > { %1350 = vperm.xlu0 %2462, %v1336_v57   ;;  %v1417_v57 = vpack.c.bf16 %v1408_v56, %v1407_v55 }
 0x26c   : > { %2291 = vmatprep.mubr.msk.bf16.mxu0 %vm1421_vm2, %v1415_v53 }
 0x26d   : > { %1355 = vperm.xlu1 %2463, %v1337_v42   ;;  %2256 = vmatmul.mubr.msk.bf16.gmra.mrb[4].mxu1 %vm1081_vm1, %v1060_v58 }
 0x26e   : > { %2263 = vmatprep.mubr.msk.bf16.mxu1 %vm1081_vm1, %v1053_v59 }
 0x26f   : > { %1360 = vperm.xlu0 %2462, %v1338_v60  }
 0x271   : > { %1365 = vperm.xlu1 %2463, %v1339_v61  }
 0x273   : > { %1370 = vperm.xlu0 %2462, %v1340_v62  }
 0x275   : > { %1375 = vperm.xlu1 %2463, %v1341_v0  }
 0x277   : > { %1380 = vperm.xlu0 %2462, %v1342_v1  }
 0x279   : > { %1629 = vperm.xlu1 %2463, %v1623_v2  }
 0x27b   : > { %1634 = vperm.xlu0 %2462, %v1624_v3  }
 0x27d   : > { %1639 = vperm.xlu1 %2463, %v1625_v4  }
 0x27f   : > { %1644 = vperm.xlu0 %2462, %v1626_v5  }
 0x2cb   : > { %v1066_v54 = vpop.permute.xlu1 %1065 }
 0x2cc   : > { %v1073_v7 = vmul.f32 %v1066_v54, %v2776_v34 }
 0x2cd   : > { %v1068_v6 = vpop.permute.xlu0 %1067 }
 0x2ce   : > { %v1074_v8 = vmul.f32 %v1068_v6, %v2776_v34 }
 0x2cf   : > { %v1070_v9 = vpop.permute.xlu1 %1069 }
 0x2d0   : > { %v1077_v10 = vpack.c.bf16 %v1074_v8, %v1073_v7  ;;  %v1075_v12 = vmul.f32 %v1070_v9, %v2776_v34 }
 0x2d1   : > { %v1072_v11 = vpop.permute.xlu0 %1071 }
 0x2d2   : > { %v1076_v13 = vmul.f32 %v1072_v11, %v2776_v34  ;;  %2259 = vmatprep.subr.bf16.mxu1 %v1077_v10 }
 0x2d3   : > { %v1237_v14 = vpop.permute.xlu1 %1236  ;;  %2260 = vmatpush3.bf16.msra.mxu1 %v1077_v10 }
 0x2d4   : > { %v1078_v17 = vpack.c.bf16 %v1076_v13, %v1075_v12  ;;  %v1244_v21 = vmul.f32 %v1237_v14, %v2802_v51 }
 0x2d5   : > { %v1239_v20 = vpop.permute.xlu0 %1238 }
 0x2d6   : > { %v1245_v22 = vmul.f32 %v1239_v20, %v2802_v51  ;;  %2261 = vmatprep.subr.bf16.mxu1 %v1078_v17 }
 0x2d7   : > { %v1241_v24 = vpop.permute.xlu1 %1240  ;;  %2262 = vmatpush3.bf16.msra.mxu1 %v1078_v17 }
 0x2d8   : > { %v1248_v27 = vpack.c.bf16 %v1245_v22, %v1244_v21  ;;  %v1246_v31 = vmul.f32 %v1241_v24, %v2802_v51 }
 0x2d9   : > { %v1243_v28 = vpop.permute.xlu0 %1242 }
 0x2da   : > { %v1247_v32 = vmul.f32 %v1243_v28, %v2802_v51  ;;  %2264 = vmatmul.mubr.msk.bf16.vlgmr.msra.gmra.mrb[0].mxu1 %vm1081_vm1, %v1054_v23  ;;  %2271 = vmatprep.subr.bf16.mxu1 %v1248_v27 }
 0x2db   : > { %2272 = vmatpush3.bf16.msra.mxu1 %v1248_v27  ;;  %2267 = vmatprep.mubr.msk.bf16.mxu1 %vm1081_vm1, %v1055_v25 }
 0x2dc   : > { %v1249_v36 = vpack.c.bf16 %v1247_v32, %v1246_v31  ;;  %v1405_v32 = vld [vmem:[%s3219_s8 + $0x10] sm:$0xff] }
 0x2de   : > { %2273 = vmatprep.subr.bf16.mxu1 %v1249_v36 }
 0x2df   : > { %2274 = vmatpush3.bf16.msra.mxu1 %v1249_v36  ;;  %v1410_v36 = vld [vmem:[%s3219_s8 + $0x38] sm:$0xff] }
 0x2e2   : > { %2268 = vmatmul.mubr.msk.bf16.gmra.mrb[4].mxu1 %vm1081_vm1, %v1056_v40  ;;  %v1416_v40 = vpack.c.bf16 %v1406_v33, %v1405_v32 }
 0x2e3   : > { %2275 = vmatprep.mubr.msk.bf16.mxu1 %vm1081_vm1, %v1061_v41  ;;  %v1418_v41 = vpack.c.bf16 %v1410_v36, %v1409_v35  ;;  %v1657_v36 = vld [vmem:[%s3221_s10] sm:$0xff] }
 0x2e8   : > { %v1346_v58 = vpop.permute.xlu1 %1345 }
 0x2ea   : > { %2276 = vmatmul.mubr.msk.bf16.vlgmr.msra.gmra.mrb[0].mxu1 %vm1081_vm1, %v1062_v45  ;;  %v1351_v42 = vpop.permute.xlu0 %1350 }
 0x2eb   : > { %2279 = vmatprep.mubr.msk.bf16.mxu1 %vm1081_vm1, %v1063_v46 }
 0x2ec   : > { %v1356_v59 = vpop.permute.xlu1 %1355 }
 0x2ee   : > { %v1361_v60 = vpop.permute.xlu0 %1360 }
 0x2f0   : > { %v1366_v1 = vpop.permute.xlu1 %1365 }
 0x2f2   : > { %2280 = vmatmul.mubr.msk.bf16.gmra.mrb[4].mxu1 %vm1081_vm1, %v1064_v49  ;;  %v1371_v54 = vpop.permute.xlu0 %1370 }
 0x2f3   : > { %2303 = vmatprep.mubr.msk.bf16.mxu1 %vm1421_vm2, %v1417_v57  ;;  %v2547_v57 = vmov 0.0  }
 0x2f4   : > { %v1376_v12 = vpop.permute.xlu1 %1375 }
 0x2f6   : > { %v1381_v17 = vpop.permute.xlu0 %1380 }
 0x3bd   : > { %v2277_v61 = vpop.f32.mrb[0].mxu1 }
 0x3be   : > { %v1385_v62 = vadd.f32 %v2277_v61, %v1356_v59  ;;  %v1296_v0 = vpop.f32.mrb[1].mxu1  ;;  %v1926_v59 = vld [vmem:[%s3222_s11] sm:$0xff]  ;;  %v1630_v61 = vpop.permute.xlu1 %1629 }
 0x3bf   : > { %v1383_v2 = vadd.f32 %v1346_v58, %v1296_v0  ;;  %v2278_v3 = vpop.f32.mrb[2].mxu1 }
 0x3c0   : > { %v1386_v4 = vadd.f32 %v2278_v3, %v1361_v60  ;;  %v1299_v5 = vpop.f32.mrb[3].mxu1  ;;  %v1393_v7 = vmax.f32 %v1385_v62, 0.0  ;;  %v1927_v60 = vld [vmem:[%s3222_s11 + $0x8] sm:$0xff]  ;;  %v1635_v62 = vpop.permute.xlu0 %1634 }
 0x3c1   : > { %v1384_v6 = vadd.f32 %v1351_v42, %v1299_v5  ;;  %v1391_v9 = vmax.f32 %v1383_v2, 0.0 }
 0x3c2   : > { %v1394_v8 = vmax.f32 %v1386_v4, 0.0  ;;  %v1640_v0 = vpop.permute.xlu1 %1639 }
 0x3c3   : > { %v1392_v10 = vmax.f32 %v1384_v6, 0.0 }
 0x3c4   : > { %v1400_v11 = vpack.c.bf16 %v1394_v8, %v1393_v7 }
 0x3c5   : > { %v1399_v13 = vpack.c.bf16 %v1392_v10, %v1391_v9  ;;  %v2281_v14 = vpop.f32.mrb[4].mxu1 }
 0x3c6   : > { %v1389_v15 = vadd.f32 %v2281_v14, %v1376_v12  ;;  %v1312_v16 = vpop.f32.mrb[5].mxu1 }
 0x3c7   : > { %v1387_v18 = vadd.f32 %v1366_v1, %v1312_v16  ;;  %v2282_v19 = vpop.f32.mrb[6].mxu1  ;;  %2283 = vmatprep.subr.bf16.mxu0 %v1399_v13  ;;  %2295 = vmatprep.subr.bf16.mxu1 %v1399_v13  ;;  %v1645_v1 = vpop.permute.xlu0 %1644 }
 0x3c8   : > { %v1390_v20 = vadd.f32 %v2282_v19, %v1381_v17  ;;  %v1315_v21 = vpop.f32.mrb[7].mxu1  ;;  %2284 = vmatpush3.bf16.msra.mxu0 %v1399_v13  ;;  %2296 = vmatpush3.bf16.msra.mxu1 %v1399_v13  ;;  %v1397_v23 = vmax.f32 %v1389_v15, 0.0 }
 0x3c9   : > { %v1388_v22 = vadd.f32 %v1371_v54, %v1315_v21  ;;  %2285 = vmatprep.subr.bf16.mxu0 %v1400_v11  ;;  %2297 = vmatprep.subr.bf16.mxu1 %v1400_v11  ;;  %v1395_v25 = vmax.f32 %v1387_v18, 0.0 }
 0x3ca   : > { %v1398_v24 = vmax.f32 %v1390_v20, 0.0 }
 0x3cb   : > { %v1396_v27 = vmax.f32 %v1388_v22, 0.0 }
 0x3cc   : > { %v1402_v28 = vpack.c.bf16 %v1398_v24, %v1397_v23  ;;  %2286 = vmatpush3.bf16.msra.mxu0 %v1400_v11  ;;  %2298 = vmatpush3.bf16.msra.mxu1 %v1400_v11 }
 0x3cd   : > { %v1401_v31 = vpack.c.bf16 %v1396_v27, %v1395_v25 }
 0x3cf   : > { %2287 = vmatprep.subr.bf16.mxu0 %v1401_v31  ;;  %2299 = vmatprep.subr.bf16.mxu1 %v1401_v31 }
 0x3d0   : > { %2288 = vmatpush3.bf16.msra.mxu0 %v1401_v31  ;;  %2300 = vmatpush3.bf16.msra.mxu1 %v1401_v31 }
 0x3d1   : > { %2289 = vmatprep.subr.bf16.mxu0 %v1402_v28  ;;  %2301 = vmatprep.subr.bf16.mxu1 %v1402_v28 }
 0x3d4   : > { %2290 = vmatpush3.bf16.msra.mxu0 %v1402_v28  ;;  %2302 = vmatpush3.bf16.msra.mxu1 %v1402_v28 }
 0x3d5   : > { %2307 = vmatprep.subr.bf16.mxu0 %v1399_v13  ;;  %2319 = vmatprep.subr.bf16.mxu1 %v2547_v57 }
 0x3d7   : > { %2292 = vmatmul.mubr.msk.bf16.vlgmr.msra.gmra.mrb[4].mxu0 %vm1421_vm2, %v1416_v40  ;;  %2304 = vmatmul.mubr.msk.bf16.vlgmr.msra.gmra.mrb[8].mxu1 %vm1421_vm2, %v1418_v41  ;;  %v1658_v40 = vld [vmem:[%s3221_s10 + $0x8] sm:$0xff]  ;;  %v1661_v41 = vld [vmem:[%s3221_s10 + $0x20] sm:$0xff] }
 0x3d8   : > { %2308 = vmatpush3.bf16.msra.mxu0 %v1399_v13  ;;  %2315 = vmatprep.mubr.msk.bf16.mxu0 %vm1421_vm2, %v1419_v29  ;;  %v1662_v29 = vld [vmem:[%s3221_s10 + $0x28] sm:$0xff]  ;;  %v1667_v26 = vpack.c.bf16 %v1658_v40, %v1657_v36 }
 0x3d9   : > { %2309 = vmatprep.subr.bf16.mxu0 %v1400_v11  ;;  %2323 = vmatprep.mubr.msk.bf16.mxu1 %vm2548_vm3, %v2547_v57 }
 0x3dc   : > { %2310 = vmatpush3.bf16.msra.mxu0 %v1400_v11 }
 0x3dd   : > { %2311 = vmatprep.subr.bf16.mxu0 %v1401_v31 }
 0x3e0   : > { %2312 = vmatpush3.bf16.msra.mxu0 %v1401_v31 }
 0x3e1   : > { %2313 = vmatprep.subr.bf16.mxu0 %v1402_v28 }
 0x3e4   : > { %2314 = vmatpush3.bf16.msra.mxu0 %v1402_v28 }
 0x3e5   : > { %2335 = vmatprep.subr.bf16.mxu0 %v2547_v57 }
 0x3e7   : > { %2316 = vmatmul.mubr.msk.bf16.vlgmr.msra.gmra.mrb[8].mxu0 %vm1421_vm2, %v1420_v44  ;;  %v1669_v44 = vpack.c.bf16 %v1662_v29, %v1661_v41 }
 0x3e8   : > { %2339 = vmatprep.mubr.msk.bf16.mxu0 %vm2548_vm3, %v2547_v57 }
 0x4aa   : > { %v2293_v45 = vpop.f32.mrb[4].mxu0  ;;  %v2305_v46 = vpop.f32.mrb[8].mxu1 }
 0x4ab   : > { %v1462_v47 = vpop.f32.mrb[5].mxu0  ;;  %1481 = vrot.lane.b32.xlu1 %v2293_v45, %s3250_s26  ;;  %v1533_v48 = vpop.f32.mrb[9].mxu1  ;;  %v1659_v45 = vld [vmem:[%s3221_s10 + $0x10] sm:$0xff] }
 0x4ac   : > { %v2294_v49 = vpop.f32.mrb[6].mxu0  ;;  %v2306_v50 = vpop.f32.mrb[10].mxu1 }
 0x4ad   : > { %1483 = vrot.lane.b32.xlu0 %v2294_v49, %s3250_s26  ;;  %v1465_v52 = vpop.f32.mrb[7].mxu0  ;;  %v1536_v53 = vpop.f32.mrb[11].mxu1 }
 0x4af   : > { %1477 = vrot.lane.b32.xlu1 %v1462_v47, %s3250_s26  ;;  %v1665_v47 = vld [vmem:[%s3221_s10 + $0x40] sm:$0xff] }
 0x4b1   : > { %1479 = vrot.lane.b32.xlu0 %v1465_v52, %s3250_s26  ;;  %v1663_v52 = vld [vmem:[%s3221_s10 + $0x30] sm:$0xff] }
 0x4ba   : > { %v2317_v55 = vpop.f32.mrb[8].mxu0 }
 0x4bb   : > { %v1592_v56 = vpop.f32.mrb[9].mxu0 }
 0x4bc   : > { %1607 = vrot.lane.b32.xlu1 %v1592_v56, %s3247_s27  ;;  %v2318_v58 = vpop.f32.mrb[10].mxu0 }
 0x4bd   : > { %v1595_v42 = vpop.f32.mrb[11].mxu0 }
 0x4be   : > { %1609 = vrot.lane.b32.xlu0 %v1595_v42, %s3247_s27 }
 0x4c0   : > { %1611 = vrot.lane.b32.xlu1 %v2317_v55, %s3247_s27 }
 0x4c2   : > { %1613 = vrot.lane.b32.xlu0 %v2318_v58, %s3247_s27 }
 0x4c4   : > { %1930 = vperm.xlu1 %2463, %v1926_v59  }
 0x4c6   : > { %1935 = vperm.xlu0 %2462, %v1927_v60  }
 0x51d   : > { %v1482_v2 = vpop.permute.xlu1 %1481 }
 0x51e   : > { %v1487_v8 = vmul.f32 %v1482_v2, %v2776_v34 }
 0x51f   : > { %v1484_v3 = vpop.permute.xlu0 %1483 }
 0x520   : > { %v1488_v12 = vmul.f32 %v1484_v3, %v2776_v34  ;;  %v1550_v17 = vadd.f32 %v2305_v46, %v1487_v8  ;;  %v1660_v46 = vld [vmem:[%s3221_s10 + $0x18] sm:$0xff] }
 0x521   : > { %v1478_v4 = vpop.permute.xlu1 %1477  ;;  %v1668_v49 = vpack.c.bf16 %v1660_v46, %v1659_v45 }
 0x522   : > { %v1485_v54 = vmul.f32 %v1478_v4, %v2776_v34  ;;  %v1551_v22 = vadd.f32 %v2306_v50, %v1488_v12 }
 0x523   : > { %v1480_v5 = vpop.permute.xlu0 %1479 }
 0x524   : > { %v1486_v6 = vmul.f32 %v1480_v5, %v2776_v34  ;;  %v1548_v9 = vadd.f32 %v1533_v48, %v1485_v54  ;;  %v1666_v48 = vld [vmem:[%s3221_s10 + $0x48] sm:$0xff] }
 0x525   : > { %v1671_v50 = vpack.c.bf16 %v1666_v48, %v1665_v47 }
 0x526   : > { %v1549_v13 = vadd.f32 %v1536_v53, %v1486_v6  ;;  %v1664_v53 = vld [vmem:[%s3221_s10 + $0x38] sm:$0xff] }
 0x527   : > { %v1670_v55 = vpack.c.bf16 %v1664_v53, %v1663_v52 }
 0x52e   : > { %v1608_v7 = vpop.permute.xlu1 %1607 }
 0x52f   : > { %v1615_v10 = vmul.f32 %v1608_v7, %v2802_v51 }
 0x530   : > { %v1610_v11 = vpop.permute.xlu0 %1609 }
 0x531   : > { %v1619_v14 = vadd.f32 %v1615_v10, %v1548_v9  ;;  %v1616_v15 = vmul.f32 %v1610_v11, %v2802_v51 }
 0x532   : > { %v1612_v16 = vpop.permute.xlu1 %1611 }
 0x533   : > { %v1647_v18 = vadd.f32 %v1630_v61, %v1619_v14  ;;  %v1620_v19 = vadd.f32 %v1616_v15, %v1549_v13  ;;  %v1617_v20 = vmul.f32 %v1612_v16, %v2802_v51 }
 0x534   : > { %v1614_v21 = vpop.permute.xlu0 %1613 }
 0x535   : > { %v1648_v23 = vadd.f32 %v1635_v62, %v1620_v19  ;;  %v1621_v24 = vadd.f32 %v1617_v20, %v1550_v17  ;;  %v1618_v25 = vmul.f32 %v1614_v21, %v2802_v51  ;;  %v1651_v27 = vmax.f32 %v1647_v18, 0.0 }
 0x537   : > { %v1652_v28 = vmax.f32 %v1648_v23, 0.0  ;;  %v1649_v31 = vadd.f32 %v1640_v0, %v1621_v24  ;;  %v1622_v32 = vadd.f32 %v1618_v25, %v1551_v22 }
 0x539   : > { %v1655_v33 = vpack.c.bf16 %v1652_v28, %v1651_v27  ;;  %v1650_v35 = vadd.f32 %v1645_v1, %v1622_v32  ;;  %v1653_v38 = vmax.f32 %v1649_v31, 0.0 }
 0x53b   : > { %v1654_v39 = vmax.f32 %v1650_v35, 0.0  ;;  %2320 = vmatpush3.bf16.msra.mxu1 %v1655_v33  ;;  %2336 = vmatpush3.bf16.msra.mxu0 %v1655_v33 }
 0x53c   : > { %2321 = vmatprep.subr.bf16.mxu1 %v2547_v57  ;;  %2337 = vmatprep.subr.bf16.mxu0 %v2547_v57 }
 0x53d   : > { %v1656_v43 = vpack.c.bf16 %v1654_v39, %v1653_v38 }
 0x53f   : > { %2322 = vmatpush3.bf16.msra.mxu1 %v1656_v43  ;;  %2338 = vmatpush3.bf16.msra.mxu0 %v1656_v43 }
 0x540   : > { %2327 = vmatprep.subr.bf16.mxu1 %v2547_v57  ;;  %2351 = vmatprep.subr.bf16.mxu0 %v2547_v57 }
 0x542   : > { %2324 = vmatmul.mubr.msk.bf16.vlgmr.msra.gmra.mrb[12].mxu1 %vm1081_vm1, %v1667_v26  ;;  %2340 = vmatmul.mubr.msk.bf16.vlgmr.msra.gmra.mrb[12].mxu0 %vm1081_vm1, %v1669_v44  ;;  %v1943_v26 = vld [vmem:[%s3223_s12] sm:$0x7f] }
 0x543   : > { %2328 = vmatpush3.bf16.msra.mxu1 %v1655_v33  ;;  %2352 = vmatpush3.bf16.msra.mxu0 %v1655_v33  ;;  %v1931_v11 = vpop.permute.xlu1 %1930  ;;  %v1944_v44 = vpack.c.bf16 %v1943_v26, %v1943_v26 }
 0x544   : > { %2329 = vmatprep.subr.bf16.mxu1 %v2547_v57  ;;  %2353 = vmatprep.subr.bf16.mxu0 %v2547_v57 }
 0x545   : > { %2331 = vmatprep.mubr.msk.bf16.mxu1 %vm2548_vm3, %v2547_v57  ;;  %2355 = vmatprep.mubr.msk.bf16.mxu0 %vm2548_vm3, %v2547_v57  ;;  %v1936_v12 = vpop.permute.xlu0 %1935 }
 0x547   : > { %2330 = vmatpush3.bf16.msra.mxu1 %v1656_v43  ;;  %2354 = vmatpush3.bf16.msra.mxu0 %v1656_v43 }
 0x548   : > { %2343 = vmatprep.subr.bf16.mxu1 %v2547_v57 }
 0x54a   : > { %2332 = vmatmul.mubr.msk.bf16.vlgmr.msra.gmra.mrb[16].mxu1 %vm1081_vm1, %v1668_v49  ;;  %2356 = vmatmul.mubr.msk.bf16.vlgmr.msra.gmra.mrb[16].mxu0 %vm1081_vm1, %v1671_v50  ;;  %v2026_v50 = vld [vmem:[#allocation2] sm:$0x1] }
 0x54b   : > { %2344 = vmatpush3.bf16.msra.mxu1 %v1655_v33  ;;  %2347 = vmatprep.mubr.msk.bf16.mxu1 %vm2548_vm3, %v2547_v57 }
 0x54c   : > { %2345 = vmatprep.subr.bf16.mxu1 %v2547_v57 }
 0x54f   : > { %2346 = vmatpush3.bf16.msra.mxu1 %v1656_v43 }
 0x550   : > { %2359 = vmatprep.subr.bf16.mxu1 %v2547_v57 }
 0x552   : > { %2348 = vmatmul.mubr.msk.bf16.vlgmr.msra.gmra.mrb[20].mxu1 %vm1081_vm1, %v1670_v55 }
 0x553   : > { %2361 = vmatprep.mubr.msk.bf16.mxu1 %vm2548_vm3, %v2547_v57 }
 0x615   : > { %v1709_v56 = vpop.f32.mrb[12].mxu1  ;;  %v1813_v58 = vpop.f32.mrb[12].mxu0 }
 0x616   : > { %v2325_v42 = vpop.f32.mrb[13].mxu1  ;;  %1716 = vrot.lane.b32.xlu1 %v1709_v56, %s3251_s30  ;;  %v2341_v59 = vpop.f32.mrb[13].mxu0 }
 0x617   : > { %v1712_v60 = vpop.f32.mrb[14].mxu1  ;;  %v1816_v61 = vpop.f32.mrb[14].mxu0  ;;  %v2464_v42 = vld [vmem:[%s3212_s1 + $0x1] sm:$0x1] }
 0x618   : > { %v2326_v62 = vpop.f32.mrb[15].mxu1  ;;  %1718 = vrot.lane.b32.xlu0 %v1712_v60, %s3251_s30  ;;  %v2342_v0 = vpop.f32.mrb[15].mxu0 }
 0x61d   : > { %v1761_v1 = vpop.f32.mrb[16].mxu1  ;;  %v1911_v2 = vpop.f32.mrb[16].mxu0 }
 0x61e   : > { %1768 = vrot.lane.b32.xlu1 %v1761_v1, %s3250_s26  ;;  %v2333_v3 = vpop.f32.mrb[17].mxu1  ;;  %v2357_v4 = vpop.f32.mrb[17].mxu0  ;;  %v2466_v1 = vld [vmem:[%s3212_s1 + $0x2] sm:$0x1] }
 0x61f   : > { %v1764_v5 = vpop.f32.mrb[18].mxu1  ;;  %v1914_v57 = vpop.f32.mrb[18].mxu0 }
 0x620   : > { %1770 = vrot.lane.b32.xlu0 %v1764_v5, %s3250_s26  ;;  %v2334_v54 = vpop.f32.mrb[19].mxu1  ;;  %v2358_v6 = vpop.f32.mrb[19].mxu0 }
 0x621   : > { %v2467_v6 = vld [vmem:[%s3212_s1 + $0x4] sm:$0x1] }
 0x625   : > { %v1859_v7 = vpop.f32.mrb[20].mxu1 }
 0x626   : > { %1866 = vrot.lane.b32.xlu1 %v1859_v7, %s3247_s27  ;;  %v2349_v8 = vpop.f32.mrb[21].mxu1 }
 0x627   : > { %v1862_v9 = vpop.f32.mrb[22].mxu1 }
 0x628   : > { %1868 = vrot.lane.b32.xlu0 %v1862_v9, %s3247_s27  ;;  %v2350_v10 = vpop.f32.mrb[23].mxu1 }
 0x62a   : > { %1918 = vrot.lane.b32.xlu1 %v1911_v2, %s3248_s29 }
 0x62c   : > { %1920 = vrot.lane.b32.xlu0 %v1914_v57, %s3248_s29 }
 0x688   : > { %v1717_v13 = vpop.permute.xlu1 %1716 }
 0x689   : > { %v1720_v18 = vmul.f32 %v1717_v13, %v2780_v37  ;;  %v2469_v13 = vld [vmem:[%s3212_s1 + $0x6] sm:$0x1] }
 0x68a   : > { %v1719_v14 = vpop.permute.xlu0 %1718 }
 0x68b   : > { %v1721_v20 = vmul.f32 %v1719_v14, %v2780_v37 }
 0x690   : > { %v1769_v15 = vpop.permute.xlu1 %1768 }
 0x691   : > { %v1772_v17 = vmul.f32 %v1769_v15, %v2776_v34 }
 0x692   : > { %v1771_v16 = vpop.permute.xlu0 %1770 }
 0x693   : > { %v1773_v19 = vmul.f32 %v1771_v16, %v2776_v34  ;;  %v1774_v21 = vadd.f32 %v1772_v17, %v1720_v18 }
 0x695   : > { %v1775_v23 = vadd.f32 %v1773_v19, %v1721_v20  ;;  %v1820_v27 = vadd.f32 %v1813_v58, %v1774_v21 }
 0x697   : > { %v1821_v33 = vadd.f32 %v1816_v61, %v1775_v23  ;;  %v2465_v61 = vld [vmem:[%s3212_s1] sm:$0x1] }
 0x698   : > { %v1867_v22 = vpop.permute.xlu1 %1866 }
 0x699   : > { %v1870_v24 = vmul.f32 %v1867_v22, %v2802_v51 }
 0x69a   : > { %v1869_v25 = vpop.permute.xlu0 %1868 }
 0x69b   : > { %v1871_v28 = vmul.f32 %v1869_v25, %v2802_v51  ;;  %v1872_v32 = vadd.f32 %v1870_v24, %v1820_v27 }
 0x69c   : > { %v1919_v31 = vpop.permute.xlu1 %1918 }
 0x69d   : > { %v1922_v35 = vmul.f32 %v1919_v31, %v2822_v63  ;;  %v1873_v38 = vadd.f32 %v1871_v28, %v1821_v33 }
 0x69e   : > { %v1921_v36 = vpop.permute.xlu0 %1920 }
 0x69f   : > { %v1924_v39 = vadd.f32 %v1922_v35, %v1872_v32  ;;  %v1923_v34 = vmul.f32 %v1921_v36, %v2822_v63 }
 0x6a1   : > { %v1938_v37 = vadd.f32 %v1931_v11, %v1924_v39  ;;  %v1925_v40 = vadd.f32 %v1923_v34, %v1873_v38  ;;  %v2468_v11 = vld [vmem:[%s3212_s1 + $0x5] sm:$0x1] }
 0x6a3   : > { %v1939_v41 = vadd.f32 %v1936_v12, %v1925_v40  ;;  %v1940_v29 = vmax.f32 %v1938_v37, 0.0 }
 0x6a5   : > { %v1941_v43 = vmax.f32 %v1939_v41, 0.0 }
 0x6a7   : > { %v1942_v51 = vpack.c.bf16 %v1941_v43, %v1940_v29 }
 0x6a9   : > { %2360 = vmatpush3.bf16.msra.mxu1 %v1942_v51 }
 0x6ac   : > { %2362 = vmatmul.mubr.msk.bf16.vlgmr.msra.gmra.mrb[24].mxu1 %vm682_vm0, %v1944_v44 }
 0x77f   : > { %v1982_v45 = vpop.f32.mrb[24].mxu1 }
 0x780   : > { %1988 = vrot.lane.b32.xlu1 %v1982_v45, %s3252_s0  ;;  %v1993_v46 = vrot.slane %v1982_v45, 1  ;;  %v2363_v47 = vpop.f32.mrb[25].mxu1  ;;  %v1999_v48 = vrot.slane %v1982_v45, 2  ;;  %v2008_v52 = vrot.slane %v1982_v45, 4  ;;  %v2014_v53 = vrot.slane %v1982_v45, 5 }
 0x781   : > { %v1985_v63 = vpop.f32.mrb[26].mxu1  ;;  %v2020_v55 = vrot.slane %v1982_v45, 6  ;;  %v2005_v5 = vrot.slane %v1982_v45, 3 }
 0x782   : > { %1995 = vrot.lane.b32.xlu0 %v1993_v46, %s3251_s30  ;;  %v2364_v49 = vpop.f32.mrb[27].mxu1  ;;  %s456_s30 = sand.u32 1, %s2524_s16  }
 0x783   : > { %s457_s21 = scalar_lea.vmem [#allocation3], %s456_s30  ;;  %s2039_s4 = scalar_lea.sflag [#allocation4], %s456_s30 }
 0x784   : > { %2001 = vrot.lane.b32.xlu1 %v1999_v48, %s3250_s26  ;;  %s2051_s26 = sshll.u32 %s457_s21, 4  ;;  %s3171_s26 = int_to_ptr.vmem [resolvable:$true] %s2051_s26 }
 0x785   : > { %s2470_s5 = scalar_lea.vmem %s3171_s26, 16  ;;  %p2477_p0 = scmp.lt.s32.totalorder %s3171_s26, %s2475_s19 }
 0x786   : > { %2029 = vperm.xlu0 %2462, %v2026_v50   ;;  %p2471_p11 = scmp.ne.s32.totalorder %s3171_s26, %s2470_s5  ;;  %p2478_p1 = scmp.lt.s32.totalorder %s2476_s28, %s2470_s5 }
 0x788   : > { %2010 = vrot.lane.b32.xlu1 %v2008_v52, %s3247_s27  ;;  %p2472_p12 = pnand %p2471_p11, %p2666_p5  ;;  %p2479_p2 = por %p2478_p1, %p2477_p0 }
 0x78a   : > { %2016 = vrot.lane.b32.xlu0 %v2014_v53, %s3248_s29  ;;  %s3169_s29 = scalar_lea.hbm %s3225_s14, %s2146_s3  ;;  %p2473_p13 = pneg %p2472_p12 }
 0x78c   : > { %2022 = vrot.lane.b32.xlu1 %v2020_v55, %s3253_s2  ;;  %p2480_p3 = pnand %p2479_p2, %p2473_p13 }
 0x7f2   : > { %v1989_v56 = vpop.permute.xlu1 %1988 }
 0x7f3   : > { %v1990_v62 = vmul.f32 %v2465_v61, %v1989_v56 }
 0x7f4   : > { %v1996_v58 = vpop.permute.xlu0 %1995 }
 0x7f5   : > { %v1997_v59 = vmul.f32 %v2464_v42, %v1996_v58 }
 0x7f6   : > { %v2002_v60 = vpop.permute.xlu1 %2001 }
 0x7f7   : > { %v1998_v0 = vadd.f32 %v1997_v59, %v1990_v62  ;;  %v2003_v2 = vmul.f32 %v2466_v1, %v2002_v60 }
 0x7f9   : > { %v2004_v3 = vadd.f32 %v2003_v2, %v1998_v0 }
 0x7fa   : > { %v2011_v4 = vpop.permute.xlu1 %2010 }
 0x7fb   : > { %v2007_v54 = vadd.f32 %v2005_v5, %v2004_v3  ;;  %v2012_v7 = vmul.f32 %v2467_v6, %v2011_v4 }
 0x7fd   : > { %v2013_v10 = vadd.f32 %v2012_v7, %v2007_v54 }
 0x7fe   : > { %v2023_v8 = vpop.permute.xlu1 %2022 }
 0x7ff   : > { %v2024_v14 = vmul.f32 %v2469_v13, %v2023_v8 }
 0x805   : > { %v2030_v57 = vpop.permute.xlu0 %2029 }
 0x806   : > { %v2035_v16 = vrot.slane %v2030_v57, %v2720_v30 }
 0x809   : > { %v2017_v9 = vpop.permute.xlu0 %2016 }
 0x80a   : > { %v2018_v12 = vmul.f32 %v2468_v11, %v2017_v9 }
 0x80c   : > { %v2019_v15 = vadd.f32 %v2018_v12, %v2013_v10 }
 0x80e   : > { %v2025_v17 = vadd.f32 %v2024_v14, %v2019_v15 }
 0x810   : > { %v2036_v18 = vadd.f32 %v2035_v16, %v2025_v17 }
 0x812   : > { %2037 = vst [vmem:[%s457_s21] sm:$0x1] %v2036_v18 }
 0x813   : > { %2483 = shalt.err (!%p2480_p3)
}
 0x814   : > { %s2484_s30 = scalar_lea.hbm %s3169_s29, 16  ;;  %s2488_s3 = scalar_lea.hbm %s3225_s14, 32 }
 0x815   : > { %p2485_p4 = scmp.ne.s32.totalorder %s3169_s29, %s2484_s30  ;;  %p2489_p9 = scmp.lt.u32.totalorder %s3169_s29, %s3225_s14 }
 0x816   : > { %p2490_p10 = scmp.lt.u32.totalorder %s2488_s3, %s2484_s30  ;;  %p2492_p12 = scmp.lt.u32.totalorder %s2484_s30, %s3169_s29 }
 0x817   : > { %p2486_p7 = pnand %p2485_p4, %p2666_p5 }
 0x818   : > { %p2491_p11 = por %p2490_p10, %p2489_p9 }
 0x819   : > { %p2487_p8 = pneg %p2486_p7 }
 0x81a   : > { %p2493_p13 = por %p2492_p12, %p2491_p11 }
 0x81c   : > { %p2494_p0 = pnand %p2493_p13, %p2487_p8 }
 0x81e   : > { %2497 = shalt.err (!%p2494_p0)
}
 0x81f   : > { %2397 = dma.vmem_to_hbm [thread:$0]  (%p2666_p5), %s3171_s26, 16, %s3169_s29, %s2039_s4  }
 0x820 PF: > { %p2403_p1 = scmp.ge.s32.totalorder %s2532_s18, 2  ;;  %s2063_s27 = sand.u32 1, %s2520_s15  }
 0x821   : > { %s2064_s5 = scalar_lea.sflag [#allocation4], %s2063_s27 }
 0x822   : > { %p2400_p2 = pnand %p2403_p1, %p2670_p6 }
 0x824   : > { %2515 = dma.done.wait (!%p2400_p2), %s2064_s5, 16  }
 0x825   : > { %2517 = vsyncadd (!%p2400_p2), %s2064_s5, 4294967280  ;;  %p26_p3 = scmp.ge.s32.totalorder %s2653_s20, 4   ;;  %s3254_s15 = smov %s2524_s16 }
 0x826   : > { %s3255_s16 = smov %s2528_s17  ;;  %s3256_s17 = smov %s2664_s23 }
 0x827   : > { %s3257_s18 = smov %s2653_s20  ;;  %28 = sbr.rel (!%p26_p3) target bundleno = 9 (0x9), region = 116 }
 0x82e   :  { %2068 = vsyncpa [#allocation4], 1 }
 0x82f   :  { %2070 = vsyncpa [#allocation4 + $0x1], 1 }

</bundles_post_ra>
